<compile_context>
chip_gen: v6e
topology: v6e:2x2x1
jax: 0.10.0
libtpu: 0.0.40
codegen_flags: <defaults>
</compile_context>

<pallas_src>
import math
import functools

import jax
import jax.numpy as jnp
from jax.experimental import pallas as pl
from jax.experimental.pallas import tpu as pltpu


# ----------------------------- in-kernel helpers -----------------------------

def _layer_norm(x, g, b, eps=1e-6):
    mu = jnp.mean(x, axis=-1, keepdims=True)
    var = jnp.mean((x - mu) ** 2, axis=-1, keepdims=True)
    return (x - mu) * jax.lax.rsqrt(var + eps) * g + b


def _gelu(x):
    # PreSumm / BERT tanh-approximation gelu.
    c = math.sqrt(2.0 / math.pi)
    return 0.5 * x * (1.0 + jnp.tanh(c * (x + 0.044715 * x ** 3)))


# --------------------------------- kernel ------------------------------------

def _encoder_kernel(num_layers, heads, is_cross, ff_chunk,
                    x_ref, mcol_ref, vrow_ref, pe_ref,
                    wq_ref, wk_ref, wv_ref, wo_ref, w1_ref, w2_ref,
                    vec_ref, lnf_ref,
                    out_ref,
                    x_scr, ctx_scr):
    l = pl.program_id(1)                         # layer index (inner grid axis)
    Bt, S, D = x_ref.shape
    F = w1_ref.shape[2]
    dh = D // heads
    neg_inf = jnp.float32(-1e18)
    bf = jnp.bfloat16

    # ---- first layer of this batch block: build the residual stream ---------
    @pl.when(l == 0)
    def _init():
        # x = top_vecs * mask[:, :, None] + pos_emb
        x_scr[...] = x_ref[...] * mcol_ref[...] + pe_ref[...][None, :, :]

    # Additive attention-bias terms (no [Bt,S,S] scratch; cheap VALU rebuild).
    vrow = vrow_ref[...]                                     # [Bt, 1, S], 1=valid
    key_bias = jnp.where(vrow > 0.5, 0.0, neg_inf)           # key-padding bias
    if is_cross:
        # PreSumm cross-mask = padding OR subsequent(causal) positions.
        qi = jax.lax.broadcasted_iota(jnp.int32, (S, S), 0)
        ki = jax.lax.broadcasted_iota(jnp.int32, (S, S), 1)
        causal_bias = jnp.where(ki > qi, neg_inf, 0.0)[None, :, :]   # [1, S, S]

    # Packed per-layer small vectors: one DMA per layer.
    vec = vec_ref[0]                                         # [10, max(D,F)] f32
    ln1_g, ln1_b = vec[0:1, :D], vec[1:2, :D]
    bq, bk, bv, bo = vec[2:3, :D], vec[3:4, :D], vec[4:5, :D], vec[5:6, :D]
    lnff_g, lnff_b = vec[6:7, :D], vec[7:8, :D]
    b2 = vec[8:9, :D]
    b1 = vec[9:10, :F]

    x = x_scr[...]                                           # [Bt, S, D] f32
    xm = x.reshape(Bt * S, D)

    # ---- self attention -------------------------------------------------------
    # PreSumm skips the pre-attention LayerNorm on layer 0.
    xn = jax.lax.cond(l == 0,
                      lambda t: t,
                      lambda t: _layer_norm(t, ln1_g, ln1_b),
                      xm)
    xn_b = xn.astype(bf)

    # Q/K/V projections (bf16 operands, f32 accumulate).  wq/bq are pre-scaled
    # by 1/sqrt(dh) in the wrapper, so no per-head scaling is needed.  Cast to
    # bf16 once (single pass) instead of per head.
    q_b = (jnp.dot(xn_b, wq_ref[0], preferred_element_type=jnp.float32) + bq
           ).reshape(Bt, S, D).astype(bf)
    k_b = (jnp.dot(xn_b, wk_ref[0], preferred_element_type=jnp.float32) + bk
           ).reshape(Bt, S, D).astype(bf)
    v_b = (jnp.dot(xn_b, wv_ref[0], preferred_element_type=jnp.float32) + bv
           ).reshape(Bt, S, D).astype(bf)

    for h in range(heads):
        sl = slice(h * dh, (h + 1) * dh)
        # scores: batched over the Bt documents in this block (shared MXU pass).
        scores = jax.lax.dot_general(
            q_b[:, :, sl], k_b[:, :, sl], (((2,), (2,)), ((0,), (0,))),
            preferred_element_type=jnp.float32) + key_bias           # [Bt, S, S]
        if is_cross:
            scores = scores + causal_bias
        smax = jnp.max(scores, axis=-1, keepdims=True)
        e = jnp.exp(scores - smax)
        p = e * pl.reciprocal(jnp.sum(e, axis=-1, keepdims=True), approx=True)
        ctx_h = jax.lax.dot_general(
            p.astype(bf), v_b[:, :, sl], (((2,), (1,)), ((0,), (0,))),
            preferred_element_type=jnp.float32)                      # [Bt, S, dh]
        # Drop into its column slot (bf16); the O-projection happens once, below.
        ctx_scr[:, :, sl] = ctx_h.astype(bf)

    ctx = ctx_scr[...].reshape(Bt * S, D)                            # bf16
    attn_out = jnp.dot(ctx, wo_ref[0],
                       preferred_element_type=jnp.float32) + bo
    out = attn_out + xm                      # dropout(context) + inputs (eval)

    # ---- PositionwiseFeedForward, tiled over d_ff -----------------------------
    ffn_in = _layer_norm(out, lnff_g, lnff_b).astype(bf)
    ffo = None
    for c0 in range(0, F, ff_chunk):
        c1 = min(c0 + ff_chunk, F)
        inter = _gelu(jnp.dot(ffn_in, w1_ref[0, :, c0:c1],
                              preferred_element_type=jnp.float32)
                      + b1[:, c0:c1])
        contrib = jnp.dot(inter.astype(bf), w2_ref[0, c0:c1, :],
                          preferred_element_type=jnp.float32)
        ffo = contrib if ffo is None else ffo + contrib
    x_new = ffo + b2 + out

    # ---- carry residual stream to next layer (skip dead store on last layer) --
    @pl.when(l != num_layers - 1)
    def _carry():
        x_scr[...] = x_new.reshape(Bt, S, D)

    # ---- last layer: final LayerNorm + write output ---------------------------
    @pl.when(l == num_layers - 1)
    def _fin():
        lnf = lnf_ref[...]
        y = _layer_norm(x_new, lnf[0:1, :], lnf[1:2, :])
        out_ref[...] = y.reshape(Bt, S, D)


# --------------------------------- wrapper -----------------------------------

def _tpu_vmem_bytes():
    try:
        info = pltpu.get_tpu_info()
        for attr in ("vmem_capacity_bytes", "vmem_bytes", "vmem_size_bytes"):
            v = getattr(info, attr, None)
            if v:
                return int(v)
    except Exception:
        pass
    return 64 * 1024 * 1024   # conservative default (v7x per-TensorCore VMEM)


def _pick_block_b(B, S, tok_cap):
    def best(require_split):
        for cand in range(min(B, 64), 0, -1):
            if B % cand == 0 and cand * S <= tok_cap:
                if (not require_split) or B // cand >= 2:
                    return cand
        return None
    # Prefer >= 2 batch-grid steps so both v7x TensorCores get work.
    return best(True) or best(False) or 1


def context_transformer_encoder(top_vecs, mask, params, *, heads, num_layers,
                                is_cross=False, block_b=None):
    """top_vecs: [B, S, D] f32;  mask: [B, S] bool (True = valid token)."""
    B, S, D = top_vecs.shape
    assert D % heads == 0
    dh = D // heads
    F = params["w1"].shape[-1]
    Fmax = max(D, F)

    # Chip-aware VMEM limit and batch-block sizing.
    phys_vmem = _tpu_vmem_bytes()
    if phys_vmem >= 96 * 1024 * 1024:       # v5e / v6e: 128 MiB physical VMEM
        vmem_limit = 100 * 1024 * 1024
        tok_cap = 2048
    else:                                    # v7x: 64 MiB per TensorCore
        vmem_limit = 48 * 1024 * 1024
        tok_cap = 512

    if block_b is None:
        block_b = _pick_block_b(B, S, tok_cap)
    assert B % block_b == 0

    # FFN column-chunk size (lane-aligned when possible).
    if F <= 1024:
        ff_chunk = F
    else:
        ff_chunk = 512
        for cand in (1024, 768, 512, 384, 256):
            if F % cand == 0:
                ff_chunk = cand
                break

    mcol = mask.astype(jnp.float32)[:, :, None]       # [B, S, 1] input masking
    vrow = mask.astype(jnp.float32)[:, None, :]       # [B, 1, S] key mask (lane-dense)
    pe = params["pe"][:S]                             # [S, D]

    bf = jnp.bfloat16
    inv_sqrt_dh = 1.0 / math.sqrt(dh)

    def pad_f(a):  # [L, 1, d] -> [L, 1, Fmax]
        return jnp.pad(a, ((0, 0), (0, 0), (0, Fmax - a.shape[-1])))

    # Pack the 10 small per-layer vectors into one array -> one DMA per layer.
    vecs = jnp.concatenate([
        pad_f(params["ln1_g"]), pad_f(params["ln1_b"]),
        pad_f(params["bq"] * inv_sqrt_dh), pad_f(params["bk"]),
        pad_f(params["bv"]), pad_f(params["bo"]),
        pad_f(params["lnff_g"]), pad_f(params["lnff_b"]),
        pad_f(params["b2"]), pad_f(params["b1"]),
    ], axis=1).astype(jnp.float32)                    # [L, 10, Fmax]

    lnf = jnp.concatenate([params["lnf_g"], params["lnf_b"]], axis=0)  # [2, D]

    args = (top_vecs.astype(jnp.float32), mcol, vrow, pe,
            (params["wq"] * inv_sqrt_dh).astype(bf),  # scale folded into Wq/bq
            params["wk"].astype(bf), params["wv"].astype(bf),
            params["wo"].astype(bf),
            params["w1"].astype(bf), params["w2"].astype(bf),
            vecs, lnf)

    def per_layer(a):        # [L, ...] stacked parameter, streamed layer by layer
        return pl.BlockSpec((1,) + a.shape[1:], lambda b, l: (l, 0, 0))

    def const2(a):           # grid-invariant 2-D parameter (pe, final LN)
        return pl.BlockSpec(a.shape, lambda b, l: (0, 0))

    in_specs = [
        pl.BlockSpec((block_b, S, D), lambda b, l: (b, 0, 0)),   # top_vecs
        pl.BlockSpec((block_b, S, 1), lambda b, l: (b, 0, 0)),   # mask column
        pl.BlockSpec((block_b, 1, S), lambda b, l: (b, 0, 0)),   # mask row
        const2(pe),                                              # pos encoding
        per_layer(args[4]), per_layer(args[5]), per_layer(args[6]),
        per_layer(args[7]), per_layer(args[8]), per_layer(args[9]),
        per_layer(vecs),                                         # packed vectors
        const2(lnf),                                             # final LN params
    ]

    kernel = functools.partial(_encoder_kernel, num_layers, heads,
                               bool(is_cross), ff_chunk)

    return pl.pallas_call(
        kernel,
        out_shape=jax.ShapeDtypeStruct((B, S, D), jnp.float32),
        grid=(B // block_b, num_layers),
        in_specs=in_specs,
        out_specs=pl.BlockSpec((block_b, S, D), lambda b, l: (b, 0, 0)),
        scratch_shapes=[
            pltpu.VMEM((block_b, S, D), jnp.float32),   # residual-stream carry
            pltpu.VMEM((block_b, S, D), jnp.bfloat16),  # per-head context buffer
        ],
        compiler_params=pltpu.CompilerParams(
            dimension_semantics=("parallel", "arbitrary"),
            vmem_limit_bytes=vmem_limit),
    )(*args)


# --------------------------- parameters & reference ---------------------------

def make_pe(max_len, dim):
    position = jnp.arange(max_len, dtype=jnp.float32)[:, None]
    div_term = jnp.exp(jnp.arange(0, dim, 2, dtype=jnp.float32)
                       * -(math.log(10000.0) / dim))
    angles = position * div_term
    pe = jnp.zeros((max_len, dim), jnp.float32)
    pe = pe.at[:, 0::2].set(jnp.sin(angles))
    pe = pe.at[:, 1::2].set(jnp.cos(angles))
    return pe


def init_params(key, d_model, d_ff, num_layers, max_len=64):
    L, D, F = num_layers, d_model, d_ff
    ks = iter(jax.random.split(key, 16))

    def nrm(shape, scale=0.02):
        return (scale * jax.random.normal(next(ks), shape)).astype(jnp.float32)

    return dict(
        pe=make_pe(max_len, D),
        ln1_g=jnp.ones((L, 1, D), jnp.float32),
        ln1_b=jnp.zeros((L, 1, D), jnp.float32),
        wq=nrm((L, D, D)), bq=nrm((L, 1, D)),
        wk=nrm((L, D, D)), bk=nrm((L, 1, D)),
        wv=nrm((L, D, D)), bv=nrm((L, 1, D)),
        wo=nrm((L, D, D)), bo=nrm((L, 1, D)),
        lnff_g=jnp.ones((L, 1, D), jnp.float32),
        lnff_b=jnp.zeros((L, 1, D), jnp.float32),
        w1=nrm((L, D, F)), b1=nrm((L, 1, F)),
        w2=nrm((L, F, D)), b2=nrm((L, 1, D)),
        lnf_g=jnp.ones((1, D), jnp.float32),
        lnf_b=jnp.zeros((1, D), jnp.float32),
    )


def _ref_single(x, mcol, masked, params, heads, num_layers):
    """Pure-JAX f32 reference (per batch element) mirroring the PyTorch math."""
    S, D = x.shape
    dh = D // heads
    x = x * mcol + params["pe"][:S]
    for l in range(num_layers):
        xn = _layer_norm(x, params["ln1_g"][l], params["ln1_b"][l]) if l != 0 else x
        q = xn @ params["wq"][l] + params["bq"][l]
        k = xn @ params["wk"][l] + params["bk"][l]
        v = xn @ params["wv"][l] + params["bv"][l]
        qh = q.reshape(S, heads, dh).transpose(1, 0, 2) / math.sqrt(dh)
        kh = k.reshape(S, heads, dh).transpose(1, 0, 2)
        vh = v.reshape(S, heads, dh).transpose(1, 0, 2)
        scores = jnp.einsum('hqd,hkd->hqk', qh, kh)
        scores = jnp.where(masked[None], -1e18, scores)
        attn = jax.nn.softmax(scores, axis=-1)
        ctx = jnp.einsum('hqk,hkd->hqd', attn, vh).transpose(1, 0, 2).reshape(S, D)
        out = ctx @ params["wo"][l] + params["bo"][l] + x
        ffn_in = _layer_norm(out, params["lnff_g"][l], params["lnff_b"][l])
        inter = _gelu(ffn_in @ params["w1"][l] + params["b1"][l])
        x = inter @ params["w2"][l] + params["b2"][l] + out
    return _layer_norm(x, params["lnf_g"], params["lnf_b"])


# ----------------------------------- main -------------------------------------

if __name__ == "__main__":
    B, S, D, F, H, L = 2, 8, 32, 64, 4, 2

    key = jax.random.PRNGKey(0)
    k_x, k_p = jax.random.split(key)
    top_vecs = jax.random.normal(k_x, (B, S, D), jnp.float32)
    lengths = jnp.array([8, 5])
    mask = jnp.arange(S)[None, :] < lengths[:, None]     # [B, S] bool, True=valid
    params = init_params(k_p, D, F, L, max_len=64)

    for is_cross in (False, True):
        y = context_transformer_encoder(top_vecs, mask, params,
                                        heads=H, num_layers=L, is_cross=is_cross)
        y = jax.block_until_ready(y)

        pad = ~mask
        if not is_cross:
            amask = jnp.broadcast_to(pad[:, None, :], (B, S, S))
        else:
            causal = jnp.triu(jnp.ones((S, S), dtype=bool), k=1)
            amask = jnp.broadcast_to(pad[:, None, :], (B, S, S)) | causal[None]

        y_ref = jax.vmap(
            lambda xb, mb, ab: _ref_single(xb, mb.astype(jnp.float32)[:, None],
                                           ab, params, H, L)
        )(top_vecs, mask, amask)

        # Kernel uses bf16 matmul operands + approx softmax reciprocal vs a pure
        # f32 reference -> modestly looser (still bug-catching) tolerance.
        err = float(jnp.max(jnp.abs(y - y_ref)))
        assert jnp.allclose(y, y_ref, atol=1e-2, rtol=1e-2), \
            f"mismatch (is_cross={is_cross}), max abs err={err}"

    print("KERNEL_OK")
</pallas_src>

<mosaic_0001>
module attributes {stable_mosaic.version = 11 : i64} {
  func.func @_encoder_kernel(%arg0: i32, %arg1: i32, %arg2: memref<1x8x32xf32, #tpu.memory_space<vmem>>, %arg3: memref<1x8x1xf32, #tpu.memory_space<vmem>>, %arg4: memref<1x1x8xf32, #tpu.memory_space<vmem>>, %arg5: memref<8x32xf32, #tpu.memory_space<vmem>>, %arg6: memref<1x32x32xbf16, #tpu.memory_space<vmem>>, %arg7: memref<1x32x32xbf16, #tpu.memory_space<vmem>>, %arg8: memref<1x32x32xbf16, #tpu.memory_space<vmem>>, %arg9: memref<1x32x32xbf16, #tpu.memory_space<vmem>>, %arg10: memref<1x32x64xbf16, #tpu.memory_space<vmem>>, %arg11: memref<1x64x32xbf16, #tpu.memory_space<vmem>>, %arg12: memref<1x10x64xf32, #tpu.memory_space<vmem>>, %arg13: memref<2x32xf32, #tpu.memory_space<vmem>>, %arg14: memref<1x8x32xf32, #tpu.memory_space<vmem>>, %arg15: memref<1x8x32xf32, #tpu.memory_space<vmem>>, %arg16: memref<1x8x32xbf16, #tpu.memory_space<vmem>>) attributes {dimension_semantics = [#tpu.dimension_semantics<parallel>, #tpu.dimension_semantics<arbitrary>], iteration_bounds = array<i64: 2, 2>, scalar_prefetch = 0 : i64, scratch_operands = 2 : i64, tpu.core_type = #tpu.core_type<tc>, window_params = [{transform_indices = @transform_0, window_bounds = array<i64: 1, 8, 32>}, {transform_indices = @transform_1, window_bounds = array<i64: 1, 8, 1>}, {transform_indices = @transform_2, window_bounds = array<i64: 1, 1, 8>}, {pipeline_mode = #tpu.pipeline_mode<synchronous>, transform_indices = @transform_3, window_bounds = array<i64: 8, 32>}, {transform_indices = @transform_4, window_bounds = array<i64: 1, 32, 32>}, {transform_indices = @transform_5, window_bounds = array<i64: 1, 32, 32>}, {transform_indices = @transform_6, window_bounds = array<i64: 1, 32, 32>}, {transform_indices = @transform_7, window_bounds = array<i64: 1, 32, 32>}, {transform_indices = @transform_8, window_bounds = array<i64: 1, 32, 64>}, {transform_indices = @transform_9, window_bounds = array<i64: 1, 64, 32>}, {transform_indices = @transform_10, window_bounds = array<i64: 1, 10, 64>}, {pipeline_mode = #tpu.pipeline_mode<synchronous>, transform_indices = @transform_11, window_bounds = array<i64: 2, 32>}, {transform_indices = @transform_12, window_bounds = array<i64: 1, 8, 32>}]} {
    %c0_i32 = arith.constant 0 : i32
    %0 = arith.cmpi eq, %arg1, %c0_i32 : i32
    %1 = arith.extui %0 : i1 to i32
    %c0_i32_0 = arith.constant 0 : i32
    %2 = arith.cmpi ne, %1, %c0_i32_0 : i32
    scf.if %2 {
      %c0_77 = arith.constant 0 : index
      %c0_78 = arith.constant 0 : index
      %c0_79 = arith.constant 0 : index
      %191 = vector.load %arg2[%c0_77, %c0_78, %c0_79] : memref<1x8x32xf32, #tpu.memory_space<vmem>>, vector<1x8x32xf32>
      %c0_80 = arith.constant 0 : index
      %c0_81 = arith.constant 0 : index
      %c0_82 = arith.constant 0 : index
      %192 = vector.load %arg3[%c0_80, %c0_81, %c0_82] : memref<1x8x1xf32, #tpu.memory_space<vmem>>, vector<1x8x1xf32>
      %193 = vector.broadcast %192 : vector<1x8x1xf32> to vector<1x8x32xf32>
      %194 = arith.mulf %191, %193 : vector<1x8x32xf32>
      %c0_83 = arith.constant 0 : index
      %c0_84 = arith.constant 0 : index
      %195 = vector.load %arg5[%c0_83, %c0_84] : memref<8x32xf32, #tpu.memory_space<vmem>>, vector<8x32xf32>
      %196 = vector.shape_cast %195 : vector<8x32xf32> to vector<1x8x32xf32>
      %197 = arith.addf %194, %196 : vector<1x8x32xf32>
      %c0_85 = arith.constant 0 : index
      %c0_86 = arith.constant 0 : index
      %c0_87 = arith.constant 0 : index
      %198 = vector.load %arg15[%c0_85, %c0_86, %c0_87] : memref<1x8x32xf32, #tpu.memory_space<vmem>>, vector<1x8x32xf32>
      tpu.vector_store %arg15[%c0_85, %c0_86, %c0_87], %197 {strides = array<i32>} : memref<1x8x32xf32, #tpu.memory_space<vmem>>, vector<1x8x32xf32>,
    } else {
    }
    %c0 = arith.constant 0 : index
    %c0_1 = arith.constant 0 : index
    %c0_2 = arith.constant 0 : index
    %3 = vector.load %arg4[%c0, %c0_1, %c0_2] : memref<1x1x8xf32, #tpu.memory_space<vmem>>, vector<1x1x8xf32>
    %cst = arith.constant 5.000000e-01 : f32
    %4 = vector.broadcast %cst : f32 to vector<1x1x8xf32>
    %5 = arith.cmpf ogt, %3, %4 : vector<1x1x8xf32>
    %cst_3 = arith.constant 0.000000e+00 : f32
    %cst_4 = arith.constant -9.99999984E+17 : f32
    %6 = vector.broadcast %cst_3 : f32 to vector<1x1x8xf32>
    %7 = vector.broadcast %cst_4 : f32 to vector<1x1x8xf32>
    %8 = arith.select %5, %6, %7 : vector<1x1x8xi1>, vector<1x1x8xf32>
    %c0_5 = arith.constant 0 : index
    %c0_6 = arith.constant 0 : index
    %c0_7 = arith.constant 0 : index
    %9 = vector.load %arg12[%c0_5, %c0_6, %c0_7] : memref<1x10x64xf32, #tpu.memory_space<vmem>>, vector<1x10x64xf32>
    %10 = vector.shape_cast %9 : vector<1x10x64xf32> to vector<10x64xf32>
    %11 = vector.extract_strided_slice %10 {offsets = [0, 0], sizes = [1, 32], strides = [1, 1]} : vector<10x64xf32> to vector<1x32xf32>
    %12 = vector.extract_strided_slice %10 {offsets = [1, 0], sizes = [1, 32], strides = [1, 1]} : vector<10x64xf32> to vector<1x32xf32>
    %13 = vector.extract_strided_slice %10 {offsets = [2, 0], sizes = [1, 32], strides = [1, 1]} : vector<10x64xf32> to vector<1x32xf32>
    %14 = vector.extract_strided_slice %10 {offsets = [3, 0], sizes = [1, 32], strides = [1, 1]} : vector<10x64xf32> to vector<1x32xf32>
    %15 = vector.extract_strided_slice %10 {offsets = [4, 0], sizes = [1, 32], strides = [1, 1]} : vector<10x64xf32> to vector<1x32xf32>
    %16 = vector.extract_strided_slice %10 {offsets = [5, 0], sizes = [1, 32], strides = [1, 1]} : vector<10x64xf32> to vector<1x32xf32>
    %17 = vector.extract_strided_slice %10 {offsets = [6, 0], sizes = [1, 32], strides = [1, 1]} : vector<10x64xf32> to vector<1x32xf32>
    %18 = vector.extract_strided_slice %10 {offsets = [7, 0], sizes = [1, 32], strides = [1, 1]} : vector<10x64xf32> to vector<1x32xf32>
    %19 = vector.extract_strided_slice %10 {offsets = [8, 0], sizes = [1, 32], strides = [1, 1]} : vector<10x64xf32> to vector<1x32xf32>
    %20 = vector.extract_strided_slice %10 {offsets = [9, 0], sizes = [1, 64], strides = [1, 1]} : vector<10x64xf32> to vector<1x64xf32>
    %c0_8 = arith.constant 0 : index
    %c0_9 = arith.constant 0 : index
    %c0_10 = arith.constant 0 : index
    %21 = vector.load %arg15[%c0_8, %c0_9, %c0_10] : memref<1x8x32xf32, #tpu.memory_space<vmem>>, vector<1x8x32xf32>
    %22 = vector.shape_cast %21 : vector<1x8x32xf32> to vector<8x32xf32>
    %c0_i32_11 = arith.constant 0 : i32
    %23 = arith.cmpi eq, %arg1, %c0_i32_11 : i32
    %24 = arith.extui %23 : i1 to i32
    %c0_i32_12 = arith.constant 0 : i32
    %25 = arith.cmpi ne, %24, %c0_i32_12 : i32
    %26 = scf.if %25 -> (vector<8x32xf32>) {
      scf.yield %22 : vector<8x32xf32>
    } else {
      %cst_77 = arith.constant dense<0.000000e+00> : vector<8xf32>
      %191 = vector.multi_reduction <add>, %22, %cst_77 [1] : vector<8x32xf32> to vector<8xf32>
      %192 = vector.shape_cast %191 : vector<8xf32> to vector<8x1xf32>
      %cst_78 = arith.constant 3.200000e+01 : f32
      %193 = vector.broadcast %cst_78 : f32 to vector<8x1xf32>
      %194 = arith.divf %192, %193 : vector<8x1xf32>
      %195 = vector.broadcast %194 : vector<8x1xf32> to vector<8x32xf32>
      %196 = arith.subf %22, %195 : vector<8x32xf32>
      %197 = arith.mulf %196, %196 : vector<8x32xf32>
      %cst_79 = arith.constant dense<0.000000e+00> : vector<8xf32>
      %198 = vector.multi_reduction <add>, %197, %cst_79 [1] : vector<8x32xf32> to vector<8xf32>
      %199 = vector.shape_cast %198 : vector<8xf32> to vector<8x1xf32>
      %cst_80 = arith.constant 3.200000e+01 : f32
      %200 = vector.broadcast %cst_80 : f32 to vector<8x1xf32>
      %201 = arith.divf %199, %200 : vector<8x1xf32>
      %202 = vector.broadcast %194 : vector<8x1xf32> to vector<8x32xf32>
      %203 = arith.subf %22, %202 : vector<8x32xf32>
      %cst_81 = arith.constant 9.99999997E-7 : f32
      %204 = vector.broadcast %cst_81 : f32 to vector<8x1xf32>
      %205 = arith.addf %201, %204 : vector<8x1xf32>
      %206 = math.rsqrt %205 : vector<8x1xf32>
      %207 = vector.broadcast %206 : vector<8x1xf32> to vector<8x32xf32>
      %208 = arith.mulf %203, %207 : vector<8x32xf32>
      %209 = vector.broadcast %11 : vector<1x32xf32> to vector<8x32xf32>
      %210 = arith.mulf %208, %209 : vector<8x32xf32>
      %211 = vector.broadcast %12 : vector<1x32xf32> to vector<8x32xf32>
      %212 = arith.addf %210, %211 : vector<8x32xf32>
      scf.yield %212 : vector<8x32xf32>
    }
    %27 = arith.truncf %26 : vector<8x32xf32> to vector<8x32xbf16>
    %c0_13 = arith.constant 0 : index
    %c0_14 = arith.constant 0 : index
    %c0_15 = arith.constant 0 : index
    %28 = vector.load %arg6[%c0_13, %c0_14, %c0_15] : memref<1x32x32xbf16, #tpu.memory_space<vmem>>, vector<1x32x32xbf16>
    %29 = vector.shape_cast %28 : vector<1x32x32xbf16> to vector<32x32xbf16>
    %cst_16 = arith.constant dense<0.000000e+00> : vector<8x32xf32>
    %30 = tpu.matmul %27, %29, %cst_16 {dimension_numbers = #tpu.dot_dimension_numbers<[1], [0], [0], [1], [0, 0, 1, 1], [], []>} : vector<8x32xbf16>, vector<32x32xbf16>, vector<8x32xf32> -> vector<8x32xf32>
    %31 = vector.broadcast %13 : vector<1x32xf32> to vector<8x32xf32>
    %32 = arith.addf %30, %31 : vector<8x32xf32>
    %33 = vector.shape_cast %32 : vector<8x32xf32> to vector<1x8x32xf32>
    %34 = arith.truncf %33 : vector<1x8x32xf32> to vector<1x8x32xbf16>
    %c0_17 = arith.constant 0 : index
    %c0_18 = arith.constant 0 : index
    %c0_19 = arith.constant 0 : index
    %35 = vector.load %arg7[%c0_17, %c0_18, %c0_19] : memref<1x32x32xbf16, #tpu.memory_space<vmem>>, vector<1x32x32xbf16>
    %36 = vector.shape_cast %35 : vector<1x32x32xbf16> to vector<32x32xbf16>
    %cst_20 = arith.constant dense<0.000000e+00> : vector<8x32xf32>
    %37 = tpu.matmul %27, %36, %cst_20 {dimension_numbers = #tpu.dot_dimension_numbers<[1], [0], [0], [1], [0, 0, 1, 1], [], []>} : vector<8x32xbf16>, vector<32x32xbf16>, vector<8x32xf32> -> vector<8x32xf32>
    %38 = vector.broadcast %14 : vector<1x32xf32> to vector<8x32xf32>
    %39 = arith.addf %37, %38 : vector<8x32xf32>
    %40 = vector.shape_cast %39 : vector<8x32xf32> to vector<1x8x32xf32>
    %41 = arith.truncf %40 : vector<1x8x32xf32> to vector<1x8x32xbf16>
    %c0_21 = arith.constant 0 : index
    %c0_22 = arith.constant 0 : index
    %c0_23 = arith.constant 0 : index
    %42 = vector.load %arg8[%c0_21, %c0_22, %c0_23] : memref<1x32x32xbf16, #tpu.memory_space<vmem>>, vector<1x32x32xbf16>
    %43 = vector.shape_cast %42 : vector<1x32x32xbf16> to vector<32x32xbf16>
    %cst_24 = arith.constant dense<0.000000e+00> : vector<8x32xf32>
    %44 = tpu.matmul %27, %43, %cst_24 {dimension_numbers = #tpu.dot_dimension_numbers<[1], [0], [0], [1], [0, 0, 1, 1], [], []>} : vector<8x32xbf16>, vector<32x32xbf16>, vector<8x32xf32> -> vector<8x32xf32>
    %45 = vector.broadcast %15 : vector<1x32xf32> to vector<8x32xf32>
    %46 = arith.addf %44, %45 : vector<8x32xf32>
    %47 = vector.shape_cast %46 : vector<8x32xf32> to vector<1x8x32xf32>
    %48 = arith.truncf %47 : vector<1x8x32xf32> to vector<1x8x32xbf16>
    %49 = vector.extract_strided_slice %34 {offsets = [0, 0, 0], sizes = [1, 8, 8], strides = [1, 1, 1]} : vector<1x8x32xbf16> to vector<1x8x8xbf16>
    %50 = vector.extract_strided_slice %41 {offsets = [0, 0, 0], sizes = [1, 8, 8], strides = [1, 1, 1]} : vector<1x8x32xbf16> to vector<1x8x8xbf16>
    %cst_25 = arith.constant dense<0.000000e+00> : vector<1x8x8xf32>
    %51 = tpu.matmul %49, %50, %cst_25 {dimension_numbers = #tpu.dot_dimension_numbers<[2], [2], [1], [1], [0, 0, 0, 1, 1, 1], [0], [0]>} : vector<1x8x8xbf16>, vector<1x8x8xbf16>, vector<1x8x8xf32> -> vector<1x8x8xf32>
    %52 = vector.broadcast %8 : vector<1x1x8xf32> to vector<1x8x8xf32>
    %53 = arith.addf %51, %52 : vector<1x8x8xf32>
    %cst_26 = arith.constant dense<0xFF800000> : vector<1x8xf32>
    %54 = vector.multi_reduction <maximumf>, %53, %cst_26 [2] : vector<1x8x8xf32> to vector<1x8xf32>
    %55 = vector.shape_cast %54 : vector<1x8xf32> to vector<1x8x1xf32>
    %56 = vector.broadcast %55 : vector<1x8x1xf32> to vector<1x8x8xf32>
    %57 = arith.subf %53, %56 : vector<1x8x8xf32>
    %58 = math.exp %57 : vector<1x8x8xf32>
    %cst_27 = arith.constant dense<0.000000e+00> : vector<1x8xf32>
    %59 = vector.multi_reduction <add>, %58, %cst_27 [2] : vector<1x8x8xf32> to vector<1x8xf32>
    %60 = vector.shape_cast %59 : vector<1x8xf32> to vector<1x8x1xf32>
    %61 = tpu.reciprocal %60 {approx = true} : vector<1x8x1xf32> -> vector<1x8x1xf32>
    %62 = vector.broadcast %61 : vector<1x8x1xf32> to vector<1x8x8xf32>
    %63 = arith.mulf %58, %62 : vector<1x8x8xf32>
    %64 = arith.truncf %63 : vector<1x8x8xf32> to vector<1x8x8xbf16>
    %65 = vector.extract_strided_slice %48 {offsets = [0, 0, 0], sizes = [1, 8, 8], strides = [1, 1, 1]} : vector<1x8x32xbf16> to vector<1x8x8xbf16>
    %cst_28 = arith.constant dense<0.000000e+00> : vector<1x8x8xf32>
    %66 = tpu.matmul %64, %65, %cst_28 {dimension_numbers = #tpu.dot_dimension_numbers<[2], [1], [1], [2], [0, 0, 0, 1, 1, 2], [0], [0]>} : vector<1x8x8xbf16>, vector<1x8x8xbf16>, vector<1x8x8xf32> -> vector<1x8x8xf32>
    %67 = arith.truncf %66 : vector<1x8x8xf32> to vector<1x8x8xbf16>
    %c0_29 = arith.constant 0 : index
    %c0_30 = arith.constant 0 : index
    %c0_31 = arith.constant 0 : index
    %68 = vector.load %arg16[%c0_29, %c0_30, %c0_31] : memref<1x8x32xbf16, #tpu.memory_space<vmem>>, vector<1x8x8xbf16>
    tpu.vector_store %arg16[%c0_29, %c0_30, %c0_31], %67 {strides = array<i32>} : memref<1x8x32xbf16, #tpu.memory_space<vmem>>, vector<1x8x8xbf16>,
    %69 = vector.extract_strided_slice %34 {offsets = [0, 0, 8], sizes = [1, 8, 8], strides = [1, 1, 1]} : vector<1x8x32xbf16> to vector<1x8x8xbf16>
    %70 = vector.extract_strided_slice %41 {offsets = [0, 0, 8], sizes = [1, 8, 8], strides = [1, 1, 1]} : vector<1x8x32xbf16> to vector<1x8x8xbf16>
    %cst_32 = arith.constant dense<0.000000e+00> : vector<1x8x8xf32>
    %71 = tpu.matmul %69, %70, %cst_32 {dimension_numbers = #tpu.dot_dimension_numbers<[2], [2], [1], [1], [0, 0, 0, 1, 1, 1], [0], [0]>} : vector<1x8x8xbf16>, vector<1x8x8xbf16>, vector<1x8x8xf32> -> vector<1x8x8xf32>
    %72 = vector.broadcast %8 : vector<1x1x8xf32> to vector<1x8x8xf32>
    %73 = arith.addf %71, %72 : vector<1x8x8xf32>
    %cst_33 = arith.constant dense<0xFF800000> : vector<1x8xf32>
    %74 = vector.multi_reduction <maximumf>, %73, %cst_33 [2] : vector<1x8x8xf32> to vector<1x8xf32>
    %75 = vector.shape_cast %74 : vector<1x8xf32> to vector<1x8x1xf32>
    %76 = vector.broadcast %75 : vector<1x8x1xf32> to vector<1x8x8xf32>
    %77 = arith.subf %73, %76 : vector<1x8x8xf32>
    %78 = math.exp %77 : vector<1x8x8xf32>
    %cst_34 = arith.constant dense<0.000000e+00> : vector<1x8xf32>
    %79 = vector.multi_reduction <add>, %78, %cst_34 [2] : vector<1x8x8xf32> to vector<1x8xf32>
    %80 = vector.shape_cast %79 : vector<1x8xf32> to vector<1x8x1xf32>
    %81 = tpu.reciprocal %80 {approx = true} : vector<1x8x1xf32> -> vector<1x8x1xf32>
    %82 = vector.broadcast %81 : vector<1x8x1xf32> to vector<1x8x8xf32>
    %83 = arith.mulf %78, %82 : vector<1x8x8xf32>
    %84 = arith.truncf %83 : vector<1x8x8xf32> to vector<1x8x8xbf16>
    %85 = vector.extract_strided_slice %48 {offsets = [0, 0, 8], sizes = [1, 8, 8], strides = [1, 1, 1]} : vector<1x8x32xbf16> to vector<1x8x8xbf16>
    %cst_35 = arith.constant dense<0.000000e+00> : vector<1x8x8xf32>
    %86 = tpu.matmul %84, %85, %cst_35 {dimension_numbers = #tpu.dot_dimension_numbers<[2], [1], [1], [2], [0, 0, 0, 1, 1, 2], [0], [0]>} : vector<1x8x8xbf16>, vector<1x8x8xbf16>, vector<1x8x8xf32> -> vector<1x8x8xf32>
    %87 = arith.truncf %86 : vector<1x8x8xf32> to vector<1x8x8xbf16>
    %c0_36 = arith.constant 0 : index
    %c0_37 = arith.constant 0 : index
    %c8 = arith.constant 8 : index
    %88 = vector.load %arg16[%c0_36, %c0_37, %c8] : memref<1x8x32xbf16, #tpu.memory_space<vmem>>, vector<1x8x8xbf16>
    tpu.vector_store %arg16[%c0_36, %c0_37, %c8], %87 {strides = array<i32>} : memref<1x8x32xbf16, #tpu.memory_space<vmem>>, vector<1x8x8xbf16>,
    %89 = vector.extract_strided_slice %34 {offsets = [0, 0, 16], sizes = [1, 8, 8], strides = [1, 1, 1]} : vector<1x8x32xbf16> to vector<1x8x8xbf16>
    %90 = vector.extract_strided_slice %41 {offsets = [0, 0, 16], sizes = [1, 8, 8], strides = [1, 1, 1]} : vector<1x8x32xbf16> to vector<1x8x8xbf16>
    %cst_38 = arith.constant dense<0.000000e+00> : vector<1x8x8xf32>
    %91 = tpu.matmul %89, %90, %cst_38 {dimension_numbers = #tpu.dot_dimension_numbers<[2], [2], [1], [1], [0, 0, 0, 1, 1, 1], [0], [0]>} : vector<1x8x8xbf16>, vector<1x8x8xbf16>, vector<1x8x8xf32> -> vector<1x8x8xf32>
    %92 = vector.broadcast %8 : vector<1x1x8xf32> to vector<1x8x8xf32>
    %93 = arith.addf %91, %92 : vector<1x8x8xf32>
    %cst_39 = arith.constant dense<0xFF800000> : vector<1x8xf32>
    %94 = vector.multi_reduction <maximumf>, %93, %cst_39 [2] : vector<1x8x8xf32> to vector<1x8xf32>
    %95 = vector.shape_cast %94 : vector<1x8xf32> to vector<1x8x1xf32>
    %96 = vector.broadcast %95 : vector<1x8x1xf32> to vector<1x8x8xf32>
    %97 = arith.subf %93, %96 : vector<1x8x8xf32>
    %98 = math.exp %97 : vector<1x8x8xf32>
    %cst_40 = arith.constant dense<0.000000e+00> : vector<1x8xf32>
    %99 = vector.multi_reduction <add>, %98, %cst_40 [2] : vector<1x8x8xf32> to vector<1x8xf32>
    %100 = vector.shape_cast %99 : vector<1x8xf32> to vector<1x8x1xf32>
    %101 = tpu.reciprocal %100 {approx = true} : vector<1x8x1xf32> -> vector<1x8x1xf32>
    %102 = vector.broadcast %101 : vector<1x8x1xf32> to vector<1x8x8xf32>
    %103 = arith.mulf %98, %102 : vector<1x8x8xf32>
    %104 = arith.truncf %103 : vector<1x8x8xf32> to vector<1x8x8xbf16>
    %105 = vector.extract_strided_slice %48 {offsets = [0, 0, 16], sizes = [1, 8, 8], strides = [1, 1, 1]} : vector<1x8x32xbf16> to vector<1x8x8xbf16>
    %cst_41 = arith.constant dense<0.000000e+00> : vector<1x8x8xf32>
    %106 = tpu.matmul %104, %105, %cst_41 {dimension_numbers = #tpu.dot_dimension_numbers<[2], [1], [1], [2], [0, 0, 0, 1, 1, 2], [0], [0]>} : vector<1x8x8xbf16>, vector<1x8x8xbf16>, vector<1x8x8xf32> -> vector<1x8x8xf32>
    %107 = arith.truncf %106 : vector<1x8x8xf32> to vector<1x8x8xbf16>
    %c0_42 = arith.constant 0 : index
    %c0_43 = arith.constant 0 : index
    %c16 = arith.constant 16 : index
    %108 = vector.load %arg16[%c0_42, %c0_43, %c16] : memref<1x8x32xbf16, #tpu.memory_space<vmem>>, vector<1x8x8xbf16>
    tpu.vector_store %arg16[%c0_42, %c0_43, %c16], %107 {strides = array<i32>} : memref<1x8x32xbf16, #tpu.memory_space<vmem>>, vector<1x8x8xbf16>,
    %109 = vector.extract_strided_slice %34 {offsets = [0, 0, 24], sizes = [1, 8, 8], strides = [1, 1, 1]} : vector<1x8x32xbf16> to vector<1x8x8xbf16>
    %110 = vector.extract_strided_slice %41 {offsets = [0, 0, 24], sizes = [1, 8, 8], strides = [1, 1, 1]} : vector<1x8x32xbf16> to vector<1x8x8xbf16>
    %cst_44 = arith.constant dense<0.000000e+00> : vector<1x8x8xf32>
    %111 = tpu.matmul %109, %110, %cst_44 {dimension_numbers = #tpu.dot_dimension_numbers<[2], [2], [1], [1], [0, 0, 0, 1, 1, 1], [0], [0]>} : vector<1x8x8xbf16>, vector<1x8x8xbf16>, vector<1x8x8xf32> -> vector<1x8x8xf32>
    %112 = vector.broadcast %8 : vector<1x1x8xf32> to vector<1x8x8xf32>
    %113 = arith.addf %111, %112 : vector<1x8x8xf32>
    %cst_45 = arith.constant dense<0xFF800000> : vector<1x8xf32>
    %114 = vector.multi_reduction <maximumf>, %113, %cst_45 [2] : vector<1x8x8xf32> to vector<1x8xf32>
    %115 = vector.shape_cast %114 : vector<1x8xf32> to vector<1x8x1xf32>
    %116 = vector.broadcast %115 : vector<1x8x1xf32> to vector<1x8x8xf32>
    %117 = arith.subf %113, %116 : vector<1x8x8xf32>
    %118 = math.exp %117 : vector<1x8x8xf32>
    %cst_46 = arith.constant dense<0.000000e+00> : vector<1x8xf32>
    %119 = vector.multi_reduction <add>, %118, %cst_46 [2] : vector<1x8x8xf32> to vector<1x8xf32>
    %120 = vector.shape_cast %119 : vector<1x8xf32> to vector<1x8x1xf32>
    %121 = tpu.reciprocal %120 {approx = true} : vector<1x8x1xf32> -> vector<1x8x1xf32>
    %122 = vector.broadcast %121 : vector<1x8x1xf32> to vector<1x8x8xf32>
    %123 = arith.mulf %118, %122 : vector<1x8x8xf32>
    %124 = arith.truncf %123 : vector<1x8x8xf32> to vector<1x8x8xbf16>
    %125 = vector.extract_strided_slice %48 {offsets = [0, 0, 24], sizes = [1, 8, 8], strides = [1, 1, 1]} : vector<1x8x32xbf16> to vector<1x8x8xbf16>
    %cst_47 = arith.constant dense<0.000000e+00> : vector<1x8x8xf32>
    %126 = tpu.matmul %124, %125, %cst_47 {dimension_numbers = #tpu.dot_dimension_numbers<[2], [1], [1], [2], [0, 0, 0, 1, 1, 2], [0], [0]>} : vector<1x8x8xbf16>, vector<1x8x8xbf16>, vector<1x8x8xf32> -> vector<1x8x8xf32>
    %127 = arith.truncf %126 : vector<1x8x8xf32> to vector<1x8x8xbf16>
    %c0_48 = arith.constant 0 : index
    %c0_49 = arith.constant 0 : index
    %c24 = arith.constant 24 : index
    %128 = vector.load %arg16[%c0_48, %c0_49, %c24] : memref<1x8x32xbf16, #tpu.memory_space<vmem>>, vector<1x8x8xbf16>
    tpu.vector_store %arg16[%c0_48, %c0_49, %c24], %127 {strides = array<i32>} : memref<1x8x32xbf16, #tpu.memory_space<vmem>>, vector<1x8x8xbf16>,
    %c0_50 = arith.constant 0 : index
    %c0_51 = arith.constant 0 : index
    %c0_52 = arith.constant 0 : index
    %129 = vector.load %arg16[%c0_50, %c0_51, %c0_52] : memref<1x8x32xbf16, #tpu.memory_space<vmem>>, vector<1x8x32xbf16>
    %130 = vector.shape_cast %129 : vector<1x8x32xbf16> to vector<8x32xbf16>
    %c0_53 = arith.constant 0 : index
    %c0_54 = arith.constant 0 : index
    %c0_55 = arith.constant 0 : index
    %131 = vector.load %arg9[%c0_53, %c0_54, %c0_55] : memref<1x32x32xbf16, #tpu.memory_space<vmem>>, vector<1x32x32xbf16>
    %132 = vector.shape_cast %131 : vector<1x32x32xbf16> to vector<32x32xbf16>
    %cst_56 = arith.constant dense<0.000000e+00> : vector<8x32xf32>
    %133 = tpu.matmul %130, %132, %cst_56 {dimension_numbers = #tpu.dot_dimension_numbers<[1], [0], [0], [1], [0, 0, 1, 1], [], []>} : vector<8x32xbf16>, vector<32x32xbf16>, vector<8x32xf32> -> vector<8x32xf32>
    %134 = vector.broadcast %16 : vector<1x32xf32> to vector<8x32xf32>
    %135 = arith.addf %133, %134 : vector<8x32xf32>
    %136 = arith.addf %135, %22 : vector<8x32xf32>
    %cst_57 = arith.constant dense<0.000000e+00> : vector<8xf32>
    %137 = vector.multi_reduction <add>, %136, %cst_57 [1] : vector<8x32xf32> to vector<8xf32>
    %138 = vector.shape_cast %137 : vector<8xf32> to vector<8x1xf32>
    %cst_58 = arith.constant 3.200000e+01 : f32
    %139 = vector.broadcast %cst_58 : f32 to vector<8x1xf32>
    %140 = arith.divf %138, %139 : vector<8x1xf32>
    %141 = vector.broadcast %140 : vector<8x1xf32> to vector<8x32xf32>
    %142 = arith.subf %136, %141 : vector<8x32xf32>
    %143 = arith.mulf %142, %142 : vector<8x32xf32>
    %cst_59 = arith.constant dense<0.000000e+00> : vector<8xf32>
    %144 = vector.multi_reduction <add>, %143, %cst_59 [1] : vector<8x32xf32> to vector<8xf32>
    %145 = vector.shape_cast %144 : vector<8xf32> to vector<8x1xf32>
    %cst_60 = arith.constant 3.200000e+01 : f32
    %146 = vector.broadcast %cst_60 : f32 to vector<8x1xf32>
    %147 = arith.divf %145, %146 : vector<8x1xf32>
    %148 = vector.broadcast %140 : vector<8x1xf32> to vector<8x32xf32>
    %149 = arith.subf %136, %148 : vector<8x32xf32>
    %cst_61 = arith.constant 9.99999997E-7 : f32
    %150 = vector.broadcast %cst_61 : f32 to vector<8x1xf32>
    %151 = arith.addf %147, %150 : vector<8x1xf32>
    %152 = math.rsqrt %151 : vector<8x1xf32>
    %153 = vector.broadcast %152 : vector<8x1xf32> to vector<8x32xf32>
    %154 = arith.mulf %149, %153 : vector<8x32xf32>
    %155 = vector.broadcast %17 : vector<1x32xf32> to vector<8x32xf32>
    %156 = arith.mulf %154, %155 : vector<8x32xf32>
    %157 = vector.broadcast %18 : vector<1x32xf32> to vector<8x32xf32>
    %158 = arith.addf %156, %157 : vector<8x32xf32>
    %159 = arith.truncf %158 : vector<8x32xf32> to vector<8x32xbf16>
    %c0_62 = arith.constant 0 : index
    %c0_63 = arith.constant 0 : index
    %c0_64 = arith.constant 0 : index
    %160 = vector.load %arg10[%c0_62, %c0_63, %c0_64] : memref<1x32x64xbf16, #tpu.memory_space<vmem>>, vector<1x32x64xbf16>
    %161 = vector.shape_cast %160 : vector<1x32x64xbf16> to vector<32x64xbf16>
    %cst_65 = arith.constant dense<0.000000e+00> : vector<8x64xf32>
    %162 = tpu.matmul %159, %161, %cst_65 {dimension_numbers = #tpu.dot_dimension_numbers<[1], [0], [0], [1], [0, 0, 1, 1], [], []>} : vector<8x32xbf16>, vector<32x64xbf16>, vector<8x64xf32> -> vector<8x64xf32>
    %163 = vector.broadcast %20 : vector<1x64xf32> to vector<8x64xf32>
    %164 = arith.addf %162, %163 : vector<8x64xf32>
    %cst_66 = arith.constant 5.000000e-01 : f32
    %165 = vector.broadcast %cst_66 : f32 to vector<8x64xf32>
    %166 = arith.mulf %165, %164 : vector<8x64xf32>
    %167 = arith.mulf %164, %164 : vector<8x64xf32>
    %168 = arith.mulf %164, %167 : vector<8x64xf32>
    %cst_67 = arith.constant 4.471500e-02 : f32
    %169 = vector.broadcast %cst_67 : f32 to vector<8x64xf32>
    %170 = arith.mulf %169, %168 : vector<8x64xf32>
    %171 = arith.addf %164, %170 : vector<8x64xf32>
    %cst_68 = arith.constant 0.797884583 : f32
    %172 = vector.broadcast %cst_68 : f32 to vector<8x64xf32>
    %173 = arith.mulf %172, %171 : vector<8x64xf32>
    %174 = math.tanh %173 : vector<8x64xf32>
    %cst_69 = arith.constant 1.000000e+00 : f32
    %175 = vector.broadcast %cst_69 : f32 to vector<8x64xf32>
    %176 = arith.addf %175, %174 : vector<8x64xf32>
    %177 = arith.mulf %166, %176 : vector<8x64xf32>
    %178 = arith.truncf %177 : vector<8x64xf32> to vector<8x64xbf16>
    %c0_70 = arith.constant 0 : index
    %c0_71 = arith.constant 0 : index
    %c0_72 = arith.constant 0 : index
    %179 = vector.load %arg11[%c0_70, %c0_71, %c0_72] : memref<1x64x32xbf16, #tpu.memory_space<vmem>>, vector<1x64x32xbf16>
    %180 = vector.shape_cast %179 : vector<1x64x32xbf16> to vector<64x32xbf16>
    %cst_73 = arith.constant dense<0.000000e+00> : vector<8x32xf32>
    %181 = tpu.matmul %178, %180, %cst_73 {dimension_numbers = #tpu.dot_dimension_numbers<[1], [0], [0], [1], [0, 0, 1, 1], [], []>} : vector<8x64xbf16>, vector<64x32xbf16>, vector<8x32xf32> -> vector<8x32xf32>
    %182 = vector.broadcast %19 : vector<1x32xf32> to vector<8x32xf32>
    %183 = arith.addf %181, %182 : vector<8x32xf32>
    %184 = arith.addf %183, %136 : vector<8x32xf32>
    %c1_i32 = arith.constant 1 : i32
    %185 = arith.cmpi ne, %arg1, %c1_i32 : i32
    %186 = arith.extui %185 : i1 to i32
    %c0_i32_74 = arith.constant 0 : i32
    %187 = arith.cmpi ne, %186, %c0_i32_74 : i32
    scf.if %187 {
      %191 = vector.shape_cast %184 : vector<8x32xf32> to vector<1x8x32xf32>
      %c0_77 = arith.constant 0 : index
      %c0_78 = arith.constant 0 : index
      %c0_79 = arith.constant 0 : index
      %192 = vector.load %arg15[%c0_77, %c0_78, %c0_79] : memref<1x8x32xf32, #tpu.memory_space<vmem>>, vector<1x8x32xf32>
      tpu.vector_store %arg15[%c0_77, %c0_78, %c0_79], %191 {strides = array<i32>} : memref<1x8x32xf32, #tpu.memory_space<vmem>>, vector<1x8x32xf32>,
    } else {
    }
    %c1_i32_75 = arith.constant 1 : i32
    %188 = arith.cmpi eq, %arg1, %c1_i32_75 : i32
    %189 = arith.extui %188 : i1 to i32
    %c0_i32_76 = arith.constant 0 : i32
    %190 = arith.cmpi ne, %189, %c0_i32_76 : i32
    scf.if %190 {
      %c0_77 = arith.constant 0 : index
      %c0_78 = arith.constant 0 : index
      %191 = vector.load %arg13[%c0_77, %c0_78] : memref<2x32xf32, #tpu.memory_space<vmem>>, vector<2x32xf32>
      %192 = vector.extract_strided_slice %191 {offsets = [0, 0], sizes = [1, 32], strides = [1, 1]} : vector<2x32xf32> to vector<1x32xf32>
      %193 = vector.extract_strided_slice %191 {offsets = [1, 0], sizes = [1, 32], strides = [1, 1]} : vector<2x32xf32> to vector<1x32xf32>
      %cst_79 = arith.constant dense<0.000000e+00> : vector<8xf32>
      %194 = vector.multi_reduction <add>, %184, %cst_79 [1] : vector<8x32xf32> to vector<8xf32>
      %195 = vector.shape_cast %194 : vector<8xf32> to vector<8x1xf32>
      %cst_80 = arith.constant 3.200000e+01 : f32
      %196 = vector.broadcast %cst_80 : f32 to vector<8x1xf32>
      %197 = arith.divf %195, %196 : vector<8x1xf32>
      %198 = vector.broadcast %197 : vector<8x1xf32> to vector<8x32xf32>
      %199 = arith.subf %184, %198 : vector<8x32xf32>
      %200 = arith.mulf %199, %199 : vector<8x32xf32>
      %cst_81 = arith.constant dense<0.000000e+00> : vector<8xf32>
      %201 = vector.multi_reduction <add>, %200, %cst_81 [1] : vector<8x32xf32> to vector<8xf32>
      %202 = vector.shape_cast %201 : vector<8xf32> to vector<8x1xf32>
      %cst_82 = arith.constant 3.200000e+01 : f32
      %203 = vector.broadcast %cst_82 : f32 to vector<8x1xf32>
      %204 = arith.divf %202, %203 : vector<8x1xf32>
      %205 = vector.broadcast %197 : vector<8x1xf32> to vector<8x32xf32>
      %206 = arith.subf %184, %205 : vector<8x32xf32>
      %cst_83 = arith.constant 9.99999997E-7 : f32
      %207 = vector.broadcast %cst_83 : f32 to vector<8x1xf32>
      %208 = arith.addf %204, %207 : vector<8x1xf32>
      %209 = math.rsqrt %208 : vector<8x1xf32>
      %210 = vector.broadcast %209 : vector<8x1xf32> to vector<8x32xf32>
      %211 = arith.mulf %206, %210 : vector<8x32xf32>
      %212 = vector.broadcast %192 : vector<1x32xf32> to vector<8x32xf32>
      %213 = arith.mulf %211, %212 : vector<8x32xf32>
      %214 = vector.broadcast %193 : vector<1x32xf32> to vector<8x32xf32>
      %215 = arith.addf %213, %214 : vector<8x32xf32>
      %216 = vector.shape_cast %215 : vector<8x32xf32> to vector<1x8x32xf32>
      %c0_84 = arith.constant 0 : index
      %c0_85 = arith.constant 0 : index
      %c0_86 = arith.constant 0 : index
      %217 = vector.load %arg14[%c0_84, %c0_85, %c0_86] : memref<1x8x32xf32, #tpu.memory_space<vmem>>, vector<1x8x32xf32>
      tpu.vector_store %arg14[%c0_84, %c0_85, %c0_86], %216 {strides = array<i32>} : memref<1x8x32xf32, #tpu.memory_space<vmem>>, vector<1x8x32xf32>,
    } else {
    }
    return
  }
  func.func @transform_0(%arg0: i32, %arg1: i32) -> (i32, i32, i32) {
    %c0_i32 = arith.constant 0 : i32
    %c0_i32_0 = arith.constant 0 : i32
    %c0_i32_1 = arith.constant 0 : i32
    return %arg0, %c0_i32, %c0_i32_0 : i32, i32, i32
  }
  func.func @transform_1(%arg0: i32, %arg1: i32) -> (i32, i32, i32) {
    %c0_i32 = arith.constant 0 : i32
    %c0_i32_0 = arith.constant 0 : i32
    %c0_i32_1 = arith.constant 0 : i32
    return %arg0, %c0_i32, %c0_i32_0 : i32, i32, i32
  }
  func.func @transform_2(%arg0: i32, %arg1: i32) -> (i32, i32, i32) {
    %c0_i32 = arith.constant 0 : i32
    %c0_i32_0 = arith.constant 0 : i32
    %c0_i32_1 = arith.constant 0 : i32
    return %arg0, %c0_i32, %c0_i32_0 : i32, i32, i32
  }
  func.func @transform_3(%arg0: i32, %arg1: i32) -> (i32, i32) {
    %c0_i32 = arith.constant 0 : i32
    %c0_i32_0 = arith.constant 0 : i32
    %c0_i32_1 = arith.constant 0 : i32
    return %c0_i32, %c0_i32_0 : i32, i32
  }
  func.func @transform_4(%arg0: i32, %arg1: i32) -> (i32, i32, i32) {
    %c0_i32 = arith.constant 0 : i32
    %c0_i32_0 = arith.constant 0 : i32
    %c0_i32_1 = arith.constant 0 : i32
    return %arg1, %c0_i32, %c0_i32_0 : i32, i32, i32
  }
  func.func @transform_5(%arg0: i32, %arg1: i32) -> (i32, i32, i32) {
    %c0_i32 = arith.constant 0 : i32
    %c0_i32_0 = arith.constant 0 : i32
    %c0_i32_1 = arith.constant 0 : i32
    return %arg1, %c0_i32, %c0_i32_0 : i32, i32, i32
  }
  func.func @transform_6(%arg0: i32, %arg1: i32) -> (i32, i32, i32) {
    %c0_i32 = arith.constant 0 : i32
    %c0_i32_0 = arith.constant 0 : i32
    %c0_i32_1 = arith.constant 0 : i32
    return %arg1, %c0_i32, %c0_i32_0 : i32, i32, i32
  }
  func.func @transform_7(%arg0: i32, %arg1: i32) -> (i32, i32, i32) {
    %c0_i32 = arith.constant 0 : i32
    %c0_i32_0 = arith.constant 0 : i32
    %c0_i32_1 = arith.constant 0 : i32
    return %arg1, %c0_i32, %c0_i32_0 : i32, i32, i32
  }
  func.func @transform_8(%arg0: i32, %arg1: i32) -> (i32, i32, i32) {
    %c0_i32 = arith.constant 0 : i32
    %c0_i32_0 = arith.constant 0 : i32
    %c0_i32_1 = arith.constant 0 : i32
    return %arg1, %c0_i32, %c0_i32_0 : i32, i32, i32
  }
  func.func @transform_9(%arg0: i32, %arg1: i32) -> (i32, i32, i32) {
    %c0_i32 = arith.constant 0 : i32
    %c0_i32_0 = arith.constant 0 : i32
    %c0_i32_1 = arith.constant 0 : i32
    return %arg1, %c0_i32, %c0_i32_0 : i32, i32, i32
  }
  func.func @transform_10(%arg0: i32, %arg1: i32) -> (i32, i32, i32) {
    %c0_i32 = arith.constant 0 : i32
    %c0_i32_0 = arith.constant 0 : i32
    %c0_i32_1 = arith.constant 0 : i32
    return %arg1, %c0_i32, %c0_i32_0 : i32, i32, i32
  }
  func.func @transform_11(%arg0: i32, %arg1: i32) -> (i32, i32) {
    %c0_i32 = arith.constant 0 : i32
    %c0_i32_0 = arith.constant 0 : i32
    %c0_i32_1 = arith.constant 0 : i32
    return %c0_i32, %c0_i32_0 : i32, i32
  }
  func.func @transform_12(%arg0: i32, %arg1: i32) -> (i32, i32, i32) {
    %c0_i32 = arith.constant 0 : i32
    %c0_i32_0 = arith.constant 0 : i32
    %c0_i32_1 = arith.constant 0 : i32
    return %arg0, %c0_i32, %c0_i32_0 : i32, i32, i32
  }
}

</mosaic_0001>

<bundles_post_ra>
// kernel: tpu_custom_call.1
= control target key start
LH: loop header
LB: loop body
LE: loop exit
PB: predicated region body
PF: predicated region fallthrough
CT: control target
= control target key end

     0   :  { %s2813_s0 = inlined_call_operand.hbm [shape: f32[2,8,32], index: 0, kind: input, shape index: {}]   ;;  %s2814_s1 = inlined_call_operand.vmem [shape: f32[2,8,1], index: 1, kind: input, shape index: {}]   ;;  %s2815_s2 = inlined_call_operand.vmem [shape: f32[2,1,8], index: 2, kind: input, shape index: {}]   ;;  %s2816_s3 = inlined_call_operand.hbm [shape: f32[8,32], index: 3, kind: input, shape index: {}]   ;;  %s2817_s4 = inlined_call_operand.vmem [shape: bf16[2,32,32], index: 4, kind: input, shape index: {}]   ;;  %s2818_s5 = inlined_call_operand.vmem [shape: bf16[2,32,32], index: 5, kind: input, shape index: {}]   ;;  %s2819_s6 = inlined_call_operand.vmem [shape: bf16[2,32,32], index: 6, kind: input, shape index: {}]   ;;  %s2820_s7 = inlined_call_operand.vmem [shape: bf16[2,32,32], index: 7, kind: input, shape index: {}]   ;;  %s2821_s8 = inlined_call_operand.vmem [shape: bf16[2,32,64], index: 8, kind: input, shape index: {}]   ;;  %s2822_s9 = inlined_call_operand.vmem [shape: bf16[2,64,32], index: 9, kind: input, shape index: {}]   ;;  %s2823_s10 = inlined_call_operand.vmem [shape: f32[2,10,64], index: 10, kind: input, shape index: {}]   ;;  %s2824_s11 = inlined_call_operand.vmem [shape: f32[2,32], index: 11, kind: input, shape index: {}]   ;;  %s2825_s12 = inlined_call_operand.hbm [shape: f32[2,8,32], index: 12, kind: output, shape index: {}]  }
   0x1   :  { %2837 = sst [smem:[#allocation23_spill]] %s2813_s0 }
   0x2   :  { %2838 = sst [smem:[#allocation24_spill]] %s2814_s1 }
   0x3   :  { %2839 = sst [smem:[#allocation25_spill]] %s2815_s2 }
   0x4   :  { %2840 = sst [smem:[#allocation26_spill]] %s2816_s3 }
   0x5   :  { %2841 = sst [smem:[#allocation27_spill]] %s2817_s4 }
   0x6   :  { %2842 = sst [smem:[#allocation28_spill]] %s2818_s5 }
   0x7   :  { %2843 = sst [smem:[#allocation29_spill]] %s2819_s6 }
   0x8   :  { %2844 = sst [smem:[#allocation30_spill]] %s2822_s9 }
   0x9   :  { %2845 = sst [smem:[#allocation31_spill]] %s2823_s10 }
   0xa   :  { %2846 = sst [smem:[#allocation32_spill]] %s2824_s11 }
   0xb   :  { %2847 = sst [smem:[#allocation33_spill]] %s2825_s12 }
   0xc   :  { %17 = vsyncpa [#allocation5], 0 }
   0xd   :  { %19 = vsyncpa [#allocation5 + $0x1], 0 }
   0xe   :  { %20 = vsyncpa [#allocation8], 0 }
   0xf   :  { %21 = vsyncpa [#allocation6], 0 }
  0x10   :  { %23 = vsyncpa [#allocation6 + $0x1], 0  ;;  %s2429_s21 = smov 0   ;;  %s2431_s22 = smov 0  }
  0x11   :  { %s2433_s23 = smov 0   ;;  %s2435_s24 = smov 0  }
  0x12   :  { %s2437_s25 = smov 0   ;;  %s2439_s26 = smov 0  }
  0x13   :  { %s2441_s27 = smov 0   ;;  %s2443_s28 = smov 0  }
  0x14 LB: > { %2848 = sst [smem:[#allocation13_spill]] %s2317_s21  ;;  %s1831_s29 = sadd.s32 4294967295, %s2345_s28   ;;  %s2345_s28 = sphi %s2443_s28, %s29_s28   ;;  %s2341_s27 = sphi %s2441_s27, %s2887_s27   ;;  %s2337_s26 = sphi %s2439_s26, %s2886_s26   ;;  %s2333_s25 = sphi %s2437_s25, %s2885_s25   ;;  %s2329_s24 = sphi %s2435_s24, %s2884_s24   ;;  %s2325_s23 = sphi %s2433_s23, %s2883_s23   ;;  %s2321_s22 = sphi %s2431_s22, %s2882_s22   ;;  %s2317_s21 = sphi %s2429_s21, %s2881_s21  }
  0x15   : > { %2849 = sst [smem:[#allocation14_spill]] %s2321_s22  ;;  %s1832_s30 = sadd.s32 4294967294, %s2345_s28  }
  0x16   : > { %2850 = sst [smem:[#allocation15_spill]] %s2325_s23  ;;  %p61_p0 = scmp.ne.s32.totalorder %s2321_s22, %s2317_s21 }
  0x17   : > { %2851 = sst [smem:[#allocation16_spill]] %s2337_s26  ;;  %p2473_p1 = scmp.eq.s32.totalorder %s1831_s29, 0 }
  0x18   : > { %2852 = sst [smem:[#allocation17_spill]] %s2341_s27  ;;  %p2477_p2 = scmp.eq.s32.totalorder %s1831_s29, 3 }
  0x19   : > { %p367_p3 = scmp.eq.s32.totalorder %s1832_s30, 3  ;;  %p2483_p4 = por %p2473_p1, %p61_p0 }
  0x1a   : > { %p1833_p5 = scmp.ge.s32.totalorder %s2345_s28, 1  ;;  %p374_p7 = scmp.lt.s32.totalorder %s2345_s28, 5 }
  0x1b   : > { %p2488_p6 = por %p367_p3, %p61_p0  ;;  %s2351_s18 = smov [#allocation7]  }
  0x1c   : > { %p2493_p8 = pnand %p1833_p5, %p374_p7  ;;  %s387_s19 = sshll.u32 %s2351_s18, 4  ;;  %s388_s19 = int_to_ptr.vmem [resolvable:$true] %s387_s19 }
  0x1d   : > { %s2856_s16 = scalar_select %p2488_p6, 1, 0 }
  0x1e   : > { %p2049_p9 = pneg %p2493_p8  ;;  %s38_s20 = sadd.s32 1, %s2337_s26 }
  0x1f   : > { %2857 = sst [smem:[#allocation18_spill]] %s2856_s16  ;;  %s2198_s29 = scalar_lea.vmem %s388_s19, 128 }
  0x20   : > { %p2050_p10 = pnand %p2049_p9, %p2473_p1  ;;  %p2199_p12 = scmp.ne.s32.totalorder %s388_s19, %s2198_s29 }
  0x21   : > { %p2206_p3 = scmp.lt.s32.totalorder %s388_s19, %s388_s19  ;;  %p2207_p6 = scmp.lt.s32.totalorder %s2198_s29, %s2198_s29 }
  0x22   : > { %p2189_p11 = pneg %p2050_p10 }
  0x23   : > { %p2208_p5 = por %p2207_p6, %p2206_p3 }
  0x24   : > { %p2201_p13 = pnand %p2199_p12, %p2189_p11 }
  0x26   : > { %p2202_p0 = pneg %p2201_p13 }
  0x28   : > { %p2209_p7 = pnand %p2208_p5, %p2202_p0 }
  0x2a   : > { %2212 = shalt.err (!%p2209_p7)
}
  0x2b   : > { %s2859_s3 = sld [smem:[#allocation26_spill]]  ;;  %p39_p9 = scmp.ge.s32.totalorder %s38_s20, 2 }
  0x2c   : > { %s41_s18 = sadd.s32 1, %s2341_s27  ;;  %s48_s29 = sadd.s32 1, %s2325_s23 }
  0x2d   : > { %p55_p6 = scmp.ne.s32.totalorder %s2325_s23, %s2321_s22  ;;  %s2889_s20 = smov (%p39_p9, %s38_s20), 0 }
  0x2e   : > { %2860 = sst [smem:[#allocation19_spill]] %s2889_s20  ;;  %s2891_s18 = smov (!%p39_p9, %s41_s18), %s2341_s27 }
  0x2f   : > { %p56_p11 = scmp.eq.s32.totalorder %s2345_s28, 0  ;;  %p2515_p12 = por %p2477_p2, %p55_p6 }
  0x30   : > { %p43_p13 = scmp.ge.s32.totalorder %s2891_s18, 2  ;;  %p2062_p0 = scmp.lt.s32.totalorder %s2345_s28, 4 }
  0x31   : > { %2052 = dma.hbm_to_vmem [thread:$0]  (!%p2050_p10), %s2859_s3, 128, %s388_s19, [#allocation8]  }
  0x32   : > { %s2861_s16 = scalar_select %p2515_p12, 1, 0 }
  0x33   : > { %p57_p3 = por %p56_p11, %p55_p6  ;;  %s401_s19 = sand.u32 1, %s2325_s23  }
  0x34   : > { %2862 = sst [smem:[#allocation20_spill]] %s2861_s16  ;;  %s2893_s18 = smov (%p43_p13, %s2891_s18), 0 }
  0x35   : > { %2863 = sst [smem:[#allocation21_spill]] %s2893_s18  ;;  %s1836_s30 = sshll.u32 %s401_s19, 3 }
  0x36   : > { %s45_s3 = ssub.s32 %s2341_s27, %s2893_s18  ;;  %s1837_s20 = sshll.u32 %s2341_s27, 7 }
  0x37   : > { %p46_p10 = scmp.eq.s32.totalorder %s45_s3, 0  ;;  %s2864_s0 = sld [smem:[#allocation23_spill]] }
  0x38   : > { %s405_s12 = scalar_lea.vmem [#allocation4], %s1836_s30  ;;  %p2534_p2 = pnand %p2062_p0, %p57_p3 }
  0x39   : > { %s412_s11 = sshll.u32 %s405_s12, 4  ;;  %s402_s9 = scalar_lea.sflag [#allocation5], %s401_s19  ;;  %s413_s11 = int_to_ptr.vmem [resolvable:$true] %s412_s11 }
  0x3a   : > { %s2530_s10 = scalar_select %p46_p10, %s2325_s23, %s48_s29  }
  0x3b   : > { %p2215_p5 = pneg %p2534_p2  ;;  %s2226_s3 = scalar_lea.vmem %s413_s11, 128 }
  0x3c   : > { %2865 = sst [smem:[#allocation22_spill]] %s2530_s10  ;;  %p2227_p7 = scmp.ne.s32.totalorder %s413_s11, %s2226_s3 }
  0x3d   : > { %s410_s14 = scalar_lea.hbm %s2864_s0, %s1837_s20  ;;  %s2352_s21 = smov [#allocation4]  }
  0x3e   : > { %p2229_p9 = pnand %p2227_p7, %p2215_p5  ;;  %s2231_s26 = sshll.u32 %s2352_s21, 4  ;;  %s2232_s26 = int_to_ptr.vmem [resolvable:$false] %s2231_s26 }
  0x3f   : > { %s2233_s12 = scalar_lea.vmem %s2232_s26, 256  ;;  %p2234_p11 = scmp.lt.s32.totalorder %s413_s11, %s2232_s26 }
  0x40   : > { %p2230_p6 = pneg %p2229_p9  ;;  %p2235_p13 = scmp.lt.s32.totalorder %s2233_s12, %s2226_s3 }
  0x42   : > { %p2236_p10 = por %p2235_p13, %p2234_p11 }
  0x44   : > { %p2237_p12 = pnand %p2236_p10, %p2230_p6 }
  0x46   : > { %2240 = shalt.err (!%p2237_p12)
}
  0x47   : > { %2056 = dma.hbm_to_vmem [thread:$0]  (!%p2534_p2), %s410_s14, 128, %s413_s11, %s402_s9  }
  0x48   : > { %490 = sbr.rel (%p2493_p8) target bundleno = 2989 (0xbad), region = 68  ;;  %s2545_s20 = sand.u32 (!%p2493_p8), 1, %s2321_s22  }
  0x49   : > { %s1839_s29 = sshll.u32 (!%p2493_p8), %s2545_s20, 3  ;;  %s493_s19 = scalar_lea.sflag (!%p2493_p8), [#allocation5], %s2545_s20 }
  0x4a   : > { %s496_s30 = scalar_lea.vmem (!%p2493_p8), [#allocation4], %s1839_s29 }
  0x4d   : > { %2304 = dma.done.wait (%p2483_p4), %s493_s19, 128  }
  0x4e   : > { %2306 = vsyncadd (%p2483_p4), %s493_s19, 4294967168 }
  0x4f   : > { %2308 = dma.done.wait (%p2473_p1), [#allocation8], 128  }
  0x50   : > { %2310 = vsyncadd (%p2473_p1), [#allocation8], 4294967168  ;;  %p583_p8 = scmp.lt.s32.totalorder %s2333_s25, 1  ;;  %p590_p12 = scmp.lt.s32.totalorder %s2329_s24, 1 }
  0x51   : > { %p626_p0 = scmp.eq.s32.totalorder %s2329_s24, 0  ;;  %s2867_s2 = sld [smem:[#allocation25_spill]] }
  0x52   : > { %s2561_s9 = scalar_select %p583_p8, %s2333_s25, 1 }
  0x53   : > { %s591_s11 = scalar_select %p590_p12, %s2329_s24, 1 }
  0x54   : > { %s1842_s15 = sshll.u32 %s2561_s9, 3  ;;  %s2868_s1 = sld [smem:[#allocation24_spill]] }
  0x55   : > { %s1895_s26 = sshll.u32 %s591_s11, 4  ;;  %s2869_s4 = sld [smem:[#allocation27_spill]] }
  0x56   : > { %s2870_s5 = sld [smem:[#allocation28_spill]]  ;;  %s2595_s12 = scalar_lea.vmem %s2821_s8, %s1895_s26 }
  0x57   : > { %s589_s14 = scalar_lea.vmem %s2867_s2, %s2561_s9  ;;  %s2871_s6 = sld [smem:[#allocation29_spill]] }
  0x58   : > { %s1900_s19 = sshll.u32 %s591_s11, 5  ;;  %s2872_s18 = sld [smem:[#allocation30_spill]] }
  0x59   : > { %s2873_s23 = sld [smem:[#allocation31_spill]]  ;;  %p1857_p1 = scmp.ne.s32.totalorder %s2329_s24, 0 }
  0x5a   : > { %s586_s21 = scalar_lea.vmem %s2868_s1, %s1842_s15  ;;  %s2590_s15 = scalar_lea.vmem %s2820_s7, %s1895_s26 }
  0x5b   : > { %s2575_s0 = scalar_lea.vmem %s2869_s4, %s1895_s26  ;;  %629 = sbr.rel (%p1857_p1) target bundleno = 227 (0xe3), region = 80 }
  0x5c   : > { %s2580_s10 = scalar_lea.vmem %s2870_s5, %s1895_s26 }
  0x5d   : > { %s2585_s17 = scalar_lea.vmem %s2871_s6, %s1895_s26  ;;  %s2605_s6 = scalar_lea.vmem [#allocation9], %s1839_s29 }
  0x5e   : > { %s2600_s2 = scalar_lea.vmem %s2872_s18, %s1900_s19 }
  0x5f   : > { %s624_s5 = scalar_lea.vmem %s2873_s23, %s1895_s26 }
  0x60   : > { %v631_v0 = vld [vmem:[%s586_s21] sm:$0xff]  ;;  %v2353_v1 = vmov 0   ;;  %v630_v2 = vld [vmem:[%s496_s30] sm:$0xff]  ;;  %vm640_vm0 = vcmask 261120  }
  0x61   : > { %2148 = vset.pattern.permute.xlu0 %v2353_v1  ;;  %v638_v3 = vld [vmem:[#allocation7] sm:$0xff] }
  0x62   : > { %634 = vperm.xlu0 %2148, %v631_v0  }
  0xdd   : > { %v635_v4 = vpop.permute.xlu0 %634 }
  0xde   : > { %v637_v5 = vmul.f32 %v635_v4, %v630_v2 }
  0xe0   : > { %v639_v6 = vadd.f32 %v638_v3, %v637_v5 }
  0xe2   : > { %641 = vst.msk [vmem:[#allocation2] sm:$0xff] %vm640_vm0, %v639_v6 }
  0xe3 PF: > { %v642_v7 = vld [vmem:[%s589_s14] sm:$0x1]  ;;  %v2612_v10 = vld [vmem:[%s624_s5 + $0x8] sm:$0x3]  ;;  %v2354_v11 = vmov -1e+18  }
  0xe4   : > { %v2608_v8 = vld [vmem:[%s624_s5] sm:$0xff]  ;;  %vm643_vm1 = vcmp.gt.f32.partialorder %v642_v7, 0.5 }
  0xe5   : > { %v2614_v12 = vsel %vm643_vm1, 0.0, %v2354_v11 }
  0xe6   : > { %653 = sbr.rel (%p626_p0) target bundleno = 543 (0x21f), region = 88 }
  0xe9   : > { %v2610_v9 = vld [vmem:[#allocation2] sm:$0xff]  }
  0xea   : > { %v2347_v13 = vmov %v2610_v9  }
  0xeb   : > { %vm654_vm2 = vcmask 261120   ;;  %v669_v23 = vlaneseq }
  0xec   : > { %v655_v14 = vsel %vm654_vm2, %v2610_v9, 0.0 }
  0xed   : > { %656 = vadd.xlane.f32.xlu0 %v655_v14  ;;  %v670_v24 = vshrl.u32 %v669_v23, 7 }
  0xef   : > { %v671_v25 = vsub.s32 0, %v670_v24  ;;  %v676_v26 = vsub.s32 1, %v670_v24 }
  0xf1   : > { %v672_v27 = vrot.slane %v2608_v8, %v671_v25  ;;  %v677_v29 = vrot.slane %v2608_v8, %v676_v26 }
 0x176   : > { %v657_v15 = vpop.xlane.xlu0 %656 }
 0x177   : > { %v659_v16 = vmul.f32 0.03125, %v657_v15 }
 0x179   : > { %v660_v17 = vsub.f32 %v2610_v9, %v659_v16 }
 0x17b   : > { %v661_v18 = vmul.f32 %v660_v17, %v660_v17 }
 0x17d   : > { %v662_v19 = vsel %vm654_vm2, %v661_v18, 0.0 }
 0x17e   : > { %663 = vadd.xlane.f32.xlu0 %v662_v19 }
 0x207   : > { %v664_v20 = vpop.xlane.xlu0 %663 }
 0x208   : > { %v665_v21 = vmul.f32 0.03125, %v664_v20 }
 0x20a   : > { %v666_v22 = vadd.f32 1e-06, %v665_v21 }
 0x20c   : > { %2149 = vrsqrt.f32 %v666_v22 }
 0x219   : > { %v2150_v28 = vpop.eup %2149 }
 0x21a   : > { %v668_v30 = vmul.f32 %v2150_v28, %v660_v17 }
 0x21c   : > { %v673_v31 = vmul.f32 %v672_v27, %v668_v30 }
 0x21e   : > { %v678_v13 = vadd.f32 %v677_v29, %v673_v31  }
 0x21f PF: > { %v2151_v32 = vld [vmem:[%s2580_s10 + $0x8] sm:$0xff]   ;;  %v2355_v33 = vmov 0.0   ;;  %v2153_v35 = vld [vmem:[%s2580_s10] sm:$0xff]   ;;  %vm2356_vm3 = vmmov 0   ;;  %v680_v37 = vpack.c.bf16 %v2349_v13, %v2349_v13  ;;  %vm701_vm4 = vcmask 261120   ;;  %s2358_s1 = smov 120   ;;  %v2349_v13 = vphi %v2347_v13, %v678_v13  }
 0x220   : > { %1949 = vmatprep.subr.bf16.mxu1 %v2355_v33  ;;  %1941 = vmatprep.subr.bf16.mxu0 %v2355_v33  ;;  %v2152_v34 = vld [vmem:[%s2575_s0 + $0x8] sm:$0xff]   ;;  %v2154_v36 = vld [vmem:[%s2575_s0] sm:$0xff]   ;;  %v685_v38 = vlaneseq  ;;  %vm874_vm5 = vcmask 64512   ;;  %s2357_s0 = smov 112   ;;  %s2359_s4 = smov 104   ;;  %vm936_vm6 = vcmask 1043456  }
 0x221   : > { %1950 = vmatpush3.bf16.msra.mxu1 %v2151_v32  ;;  %1953 = vmatprep.mubr.msk.bf16.mxu1 %vm2356_vm3, %v2355_v33  ;;  %v2155_v57 = vld [vmem:[%s2585_s17 + $0x8] sm:$0xff]   ;;  %v2156_v58 = vld [vmem:[%s2585_s17] sm:$0xff]   ;;  %vm981_vm7 = vcmask 60416   ;;  %s2360_s5 = smov 8   ;;  %s2361_s10 = smov 16   ;;  %vm1103_vm8 = vcmask 126016  }
 0x222   : > { %1942 = vmatpush3.bf16.msra.mxu0 %v2152_v34  ;;  %1951 = vmatprep.subr.bf16.mxu1 %v2355_v33  ;;  %v2643_v39 = vshrl.u32 %v685_v38, 7  ;;  %s2362_s29 = smov 24   ;;  %vm1222_vm9 = vcmask 191616   ;;  %vm1341_vm10 = vcmask 257216   ;;  %vm1542_vm11 = vcmask 523264   ;;  %p1889_p4 = scmp.eq.s32.totalorder %s2329_s24, 1 }
 0x223   : > { %1943 = vmatprep.subr.bf16.mxu0 %v2355_v33  ;;  %1945 = vmatprep.mubr.msk.bf16.mxu0 %vm2356_vm3, %v2355_v33 }
 0x224   : > { %v752_v40 = vsub.s32 3, %v2643_v39  ;;  %v687_v41 = vsub.s32 2, %v2643_v39  ;;  %v2683_v4 = vsub.s32 0, %v2643_v39  ;;  %v813_v16 = vsub.s32 4, %v2643_v39 }
 0x225   : > { %1952 = vmatpush3.bf16.msra.mxu1 %v2153_v35 }
 0x226   : > { %1944 = vmatpush3.bf16.msra.mxu0 %v2154_v36  ;;  %1965 = vmatprep.subr.bf16.mxu1 %v2355_v33  ;;  %v753_v42 = vrot.slane %v2608_v8, %v752_v40  ;;  %v688_v43 = vrot.slane %v2608_v8, %v687_v41  ;;  %v872_v5 = vrot.slane %v2614_v12, %v2683_v4 }
 0x227   : > { %1957 = vmatprep.subr.bf16.mxu0 %v2355_v33  ;;  %v814_v17 = vrot.slane %v2608_v8, %v813_v16 }
 0x228   : > { %1954 = vmatmul.mubr.msk.bf16.vlgmr.msra.gmra.mxu1 %vm701_vm4, %v680_v37 }
 0x229   : > { %1946 = vmatmul.mubr.msk.bf16.vlgmr.msra.gmra.mxu0 %vm701_vm4, %v680_v37  ;;  %1967 = vmatprep.mubr.msk.bf16.mxu1 %vm2356_vm3, %v2355_v33 }
 0x22a   : > { %1961 = vmatprep.mubr.msk.bf16.mxu0 %vm2356_vm3, %v2355_v33  ;;  %1958 = vmatpush3.bf16.msra.mxu0 %v2155_v57 }
 0x22b   : > { %1959 = vmatprep.subr.bf16.mxu0 %v2355_v33 }
 0x22e   : > { %1960 = vmatpush3.bf16.msra.mxu0 %v2156_v58 }
 0x22f   : > { %1971 = vmatprep.subr.bf16.mxu0 %v2355_v33 }
 0x231   : > { %1962 = vmatmul.mubr.msk.bf16.vlgmr.msra.gmra.mxu0 %vm701_vm4, %v680_v37 }
 0x232   : > { %1973 = vmatprep.mubr.msk.bf16.mxu0 %vm2356_vm3, %v2355_v33 }
 0x2e8   : > { %v800_v44 = vpop.f32.mrf.mxu1 }
 0x2e9   : > { %v801_v45 = vadd.f32 %v800_v44, %v753_v42  ;;  %v739_v46 = vpop.f32.mrf.mxu0 }
 0x2ea   : > { %v740_v47 = vadd.f32 %v739_v46, %v688_v43  ;;  %v1955_v48 = vpop.f32.mrf.mxu1 }
 0x2eb   : > { %v806_v49 = vpack.c.bf16 %v801_v45, %v801_v45  ;;  %v1947_v50 = vpop.f32.mrf.mxu0 }
 0x2ec   : > { %v803_v51 = vpop.f32.mrf.mxu1  ;;  %v745_v52 = vpack.c.bf16 %v740_v47, %v740_v47 }
 0x2ed   : > { %1107 = vrot.lane.b32.xlu1 %v806_v49, %s2357_s0  ;;  %987 = vrot.lane.b32.xlu0 %v806_v49, %s2358_s1  ;;  %v742_v53 = vpop.f32.mrf.mxu0  ;;  %v879_v54 = vsel %vm874_vm5, %v806_v49, 0 }
 0x2ee   : > { %v1956_v55 = vpop.f32.mrf.mxu1  ;;  %1966 = vmatpush3.bf16.xpose.msra.mxu1 %v879_v54 }
 0x2ef   : > { %v1948_v56 = vpop.f32.mrf.mxu0  ;;  %1977 = vmatprep.subr.bf16.mxu1 %v2355_v33 }
 0x2f1   : > { %1105 = vrot.lane.b32.xlu1 %v745_v52, %s2357_s0  ;;  %984 = vrot.lane.b32.xlu0 %v745_v52, %s2358_s1  ;;  %v861_v18 = vpop.f32.mrf.mxu0 }
 0x2f2   : > { %v862_v19 = vadd.f32 %v861_v18, %v814_v17 }
 0x2f3   : > { %v1963_v20 = vpop.f32.mrf.mxu0 }
 0x2f4   : > { %v867_v21 = vpack.c.bf16 %v862_v19, %v862_v19 }
 0x2f5   : > { %1224 = vrot.lane.b32.xlu1 %v745_v52, %s2359_s4  ;;  %1226 = vrot.lane.b32.xlu0 %v806_v49, %s2359_s4  ;;  %v864_v22 = vpop.f32.mrf.mxu0 }
 0x2f6   : > { %1968 = vmatmul.mubr.msk.bf16.vlgmr.msra.gmra.mxu1 %vm874_vm5, %v745_v52  ;;  %v938_v12 = vsel %vm936_vm6, %v867_v21, 0 }
 0x2f7   : > { %1979 = vmatprep.mubr.msk.bf16.mxu1 %vm2356_vm3, %v2355_v33  ;;  %v1964_v23 = vpop.f32.mrf.mxu0  ;;  %1972 = vmatpush3.bf16.msra.mxu0 %v938_v12 }
 0x2f8   : > { %1983 = vmatprep.subr.bf16.mxu0 %v2355_v33 }
 0x35f   : > { %v988_v59 = vpop.permute.xlu0 %987  ;;  %v1108_v61 = vpop.permute.xlu1 %1107 }
 0x360   : > { %v993_v60 = vsel %vm874_vm5, %v988_v59, 0  ;;  %v1113_v63 = vsel %vm874_vm5, %v1108_v61, 0 }
 0x361   : > { %1978 = vmatpush3.bf16.xpose.msra.mxu1 %v993_v60 }
 0x362   : > { %1989 = vmatprep.subr.bf16.mxu1 %v2355_v33 }
 0x363   : > { %v985_v62 = vpop.permute.xlu0 %984  ;;  %v1106_v1 = vpop.permute.xlu1 %1105 }
 0x367   : > { %v1227_v0 = vpop.permute.xlu0 %1226  ;;  %v1225_v3 = vpop.permute.xlu1 %1224 }
 0x368   : > { %1980 = vmatmul.mubr.msk.bf16.vlgmr.msra.gmra.mxu1 %vm874_vm5, %v985_v62  ;;  %v1232_v2 = vsel %vm874_vm5, %v1227_v0, 0 }
 0x369   : > { %1990 = vmatpush3.bf16.xpose.msra.mxu1 %v1113_v63  ;;  %1991 = vmatprep.mubr.msk.bf16.mxu1 %vm2356_vm3, %v2355_v33 }
 0x36a   : > { %2001 = vmatprep.subr.bf16.mxu1 %v2355_v33 }
 0x370   : > { %1992 = vmatmul.mubr.msk.bf16.vlgmr.msra.gmra.mxu1 %vm874_vm5, %v1106_v1 }
 0x371   : > { %2002 = vmatpush3.bf16.xpose.msra.mxu1 %v1232_v2  ;;  %2003 = vmatprep.mubr.msk.bf16.mxu1 %vm2356_vm3, %v2355_v33 }
 0x372   : > { %2013 = vmatprep.subr.bf16.mxu1 %v2355_v33 }
 0x378   : > { %2004 = vmatmul.mubr.msk.bf16.vlgmr.msra.gmra.mxu1 %vm874_vm5, %v1225_v3 }
 0x379   : > { %2017 = vmatprep.mubr.msk.bf16.mxu1 %vm2356_vm3, %v2355_v33 }
 0x3b6   : > { %v915_v6 = vpop.f32.mrf.mxu1 }
 0x3b7   : > { %v916_v7 = vadd.f32 %v915_v6, %v872_v5 }
 0x3b8   : > { %v1969_v11 = vpop.f32.mrf.mxu1 }
 0x3b9   : > { %v921_v13 = vsel %vm874_vm5, %v916_v7, -inf }
 0x3ba   : > { %922 = vmax.xlane.f32.xlu0 %v921_v13  ;;  %v918_v14 = vpop.f32.mrf.mxu1 }
 0x3bc   : > { %v1970_v15 = vpop.f32.mrf.mxu1 }
 0x428   : > { %v1029_v24 = vpop.f32.mrf.mxu1 }
 0x429   : > { %v1030_v25 = vadd.f32 %v1029_v24, %v872_v5 }
 0x42a   : > { %v1981_v26 = vpop.f32.mrf.mxu1 }
 0x42b   : > { %v1035_v27 = vsel %vm874_vm5, %v1030_v25, -inf }
 0x42c   : > { %1036 = vmax.xlane.f32.xlu1 %v1035_v27  ;;  %v1032_v28 = vpop.f32.mrf.mxu1 }
 0x42e   : > { %v1982_v29 = vpop.f32.mrf.mxu1 }
 0x430   : > { %v1149_v30 = vpop.f32.mrf.mxu1 }
 0x431   : > { %v1150_v31 = vadd.f32 %v1149_v30, %v872_v5 }
 0x432   : > { %v1993_v32 = vpop.f32.mrf.mxu1 }
 0x433   : > { %v1155_v34 = vsel %vm874_vm5, %v1150_v31, -inf }
 0x434   : > { %1156 = vmax.xlane.f32.xlu0 %v1155_v34  ;;  %v1152_v35 = vpop.f32.mrf.mxu1 }
 0x436   : > { %v1994_v36 = vpop.f32.mrf.mxu1 }
 0x438   : > { %v1268_v37 = vpop.f32.mrf.mxu1 }
 0x439   : > { %v1269_v38 = vadd.f32 %v1268_v37, %v872_v5  ;;  %v2157_v37 = vld [vmem:[%s2590_s15 + $0x8] sm:$0xff]  }
 0x43a   : > { %v2005_v40 = vpop.f32.mrf.mxu1  ;;  %2014 = vmatpush3.bf16.msra.mxu1 %v2157_v37 }
 0x43b   : > { %v1274_v41 = vsel %vm874_vm5, %v1269_v38, -inf  ;;  %v2158_v40 = vld [vmem:[%s2590_s15] sm:$0xff]   ;;  %2015 = vmatprep.subr.bf16.mxu1 %v2355_v33 }
 0x43c   : > { %1275 = vmax.xlane.f32.xlu0 %v1274_v41  ;;  %v1271_v42 = vpop.f32.mrf.mxu1 }
 0x43e   : > { %v2006_v43 = vpop.f32.mrf.mxu1  ;;  %2016 = vmatpush3.bf16.msra.mxu1 %v2158_v40 }
 0x43f   : > { %2029 = vmatprep.subr.bf16.mxu1 %v2355_v33 }
 0x443   : > { %v923_v44 = vpop.xlane.xlu0 %922 }
 0x444   : > { %v924_v45 = vsub.f32 %v916_v7, %v923_v44 }
 0x446   : > { %v925_v46 = vmul.f32 1.442695, %v924_v45 }
 0x448   : > { %2165 = vpow2.f32 %v925_v46 }
 0x455   : > { %v2166_v47 = vpop.eup %2165 }
 0x456   : > { %v927_v48 = vsel %vm874_vm5, %v2166_v47, 0.0 }
 0x457   : > { %928 = vadd.xlane.f32.xlu1 %v927_v48 }
 0x468   : > { %1048 = vrot.lane.b32.xlu1 %v867_v21, %s2358_s1 }
 0x4b5   : > { %v1037_v49 = vpop.xlane.xlu1 %1036 }
 0x4b6   : > { %v1038_v50 = vsub.f32 %v1030_v25, %v1037_v49 }
 0x4b8   : > { %v1039_v51 = vmul.f32 1.442695, %v1038_v50 }
 0x4ba   : > { %2167 = vpow2.f32 %v1039_v51 }
 0x4bd   : > { %v1157_v52 = vpop.xlane.xlu0 %1156 }
 0x4be   : > { %v1158_v53 = vsub.f32 %v1150_v31, %v1157_v52 }
 0x4c0   : > { %v1159_v54 = vmul.f32 1.442695, %v1158_v53 }
 0x4c2   : > { %2169 = vpow2.f32 %v1159_v54  ;;  %v1350_v54 = vsub.s32 5, %v2643_v39 }
 0x4c5   : > { %v1276_v55 = vpop.xlane.xlu0 %1275 }
 0x4c6   : > { %v1277_v56 = vsub.f32 %v1269_v38, %v1276_v55  ;;  %v1351_v55 = vrot.slane %v2608_v8, %v1350_v54 }
 0x4c7   : > { %v2168_v57 = vpop.eup %2167 }
 0x4c8   : > { %v1278_v58 = vmul.f32 1.442695, %v1277_v56  ;;  %v1041_v59 = vsel %vm874_vm5, %v2168_v57, 0.0 }
 0x4c9   : > { %1042 = vadd.xlane.f32.xlu0 %v1041_v59 }
 0x4ca   : > { %2171 = vpow2.f32 %v1278_v58 }
 0x4cf   : > { %v2170_v60 = vpop.eup %2169 }
 0x4d0   : > { %v1161_v61 = vsel %vm874_vm5, %v2170_v60, 0.0 }
 0x4d1   : > { %1162 = vadd.xlane.f32.xlu1 %v1161_v61 }
 0x4d7   : > { %v2172_v62 = vpop.eup %2171 }
 0x4d8   : > { %v1280_v63 = vsel %vm874_vm5, %v2172_v62, 0.0 }
 0x4d9   : > { %1281 = vadd.xlane.f32.xlu0 %v1280_v63 }
 0x4e0   : > { %v929_v0 = vpop.xlane.xlu1 %928 }
 0x4e1   : > { %2173 = vrcp.f32 %v929_v0 }
 0x4e2   : > { %1286 = vrot.lane.b32.xlu1 %v867_v21, %s2359_s4 }
 0x4e4   : > { %v1049_v2 = vpop.permute.xlu1 %1048 }
 0x4e5   : > { %v1054_v6 = vsel %vm936_vm6, %v1049_v2, 0 }
 0x4ee   : > { %v2174_v1 = vpop.eup %2173 }
 0x4ef   : > { %1167 = vrot.lane.b32.xlu0 %v867_v21, %s2357_s0  ;;  %v931_v3 = vmul.f32 %v2174_v1, %v2166_v47 }
 0x4f1   : > { %v932_v5 = vpack.c.bf16 %v931_v3, %v931_v3 }
 0x4f3   : > { %1974 = vmatmul.mubr.msk.bf16.vlgmr.msra.gmra.mxu0 %vm874_vm5, %v932_v5  ;;  %v2159_v5 = vld [vmem:[%s2595_s12 + $0x8] sm:$0xff]  }
 0x4f4   : > { %1984 = vmatpush3.bf16.msra.mxu0 %v1054_v6  ;;  %1985 = vmatprep.mubr.msk.bf16.mxu0 %vm2356_vm3, %v2355_v33  ;;  %v2160_v6 = vld [vmem:[%s2595_s12] sm:$0xff]  }
 0x4f5   : > { %1995 = vmatprep.subr.bf16.mxu0 %v2355_v33 }
 0x552   : > { %v1043_v7 = vpop.xlane.xlu0 %1042 }
 0x553   : > { %2175 = vrcp.f32 %v1043_v7 }
 0x55a   : > { %v1163_v11 = vpop.xlane.xlu1 %1162 }
 0x55b   : > { %2177 = vrcp.f32 %v1163_v11 }
 0x55e   : > { %v1287_v21 = vpop.permute.xlu1 %1286 }
 0x55f   : > { %v1292_v12 = vsel %vm936_vm6, %v1287_v21, 0 }
 0x560   : > { %v2176_v13 = vpop.eup %2175 }
 0x561   : > { %v1045_v14 = vmul.f32 %v2176_v13, %v2168_v57  ;;  %v1424_v13 = vsub.s32 6, %v2643_v39 }
 0x562   : > { %v1282_v15 = vpop.xlane.xlu0 %1281 }
 0x563   : > { %2179 = vrcp.f32 %v1282_v15  ;;  %v1046_v16 = vpack.c.bf16 %v1045_v14, %v1045_v14  ;;  %v1429_v14 = vsub.s32 7, %v2643_v39  ;;  %v1425_v15 = vrot.slane %v2608_v8, %v1424_v13 }
 0x565   : > { %1986 = vmatmul.mubr.msk.bf16.vlgmr.msra.gmra.mxu0 %vm874_vm5, %v1046_v16 }
 0x566   : > { %v1168_v17 = vpop.permute.xlu0 %1167  ;;  %1997 = vmatprep.mubr.msk.bf16.mxu0 %vm2356_vm3, %v2355_v33 }
 0x567   : > { %v1173_v18 = vsel %vm936_vm6, %v1168_v17, 0 }
 0x568   : > { %v2178_v19 = vpop.eup %2177  ;;  %1996 = vmatpush3.bf16.msra.mxu0 %v1173_v18  ;;  %v1430_v18 = vrot.slane %v2608_v8, %v1429_v14  ;;  %v1439_v8 = vsub.s32 1, %v2643_v39  ;;  %v1517_v39 = vrot.slane %v2612_v10, %v2683_v4 }
 0x569   : > { %2007 = vmatprep.subr.bf16.mxu0 %v2355_v33  ;;  %v1165_v20 = vmul.f32 %v2178_v19, %v2170_v60 }
 0x56b   : > { %v1166_v22 = vpack.c.bf16 %v1165_v20, %v1165_v20 }
 0x56d   : > { %1998 = vmatmul.mubr.msk.bf16.vlgmr.msra.gmra.mxu0 %vm874_vm5, %v1166_v22  ;;  %v2161_v22 = vld [vmem:[%s2600_s2 + $0x18] sm:$0xff]  }
 0x56e   : > { %2008 = vmatpush3.bf16.msra.mxu0 %v1292_v12  ;;  %2009 = vmatprep.mubr.msk.bf16.mxu0 %vm2356_vm3, %v2355_v33  ;;  %v2162_v12 = vld [vmem:[%s2600_s2 + $0x10] sm:$0xff]  }
 0x56f   : > { %2021 = vmatprep.subr.bf16.mxu0 %v2355_v33 }
 0x570   : > { %v2180_v23 = vpop.eup %2179 }
 0x571   : > { %v1284_v24 = vmul.f32 %v2180_v23, %v2172_v62  ;;  %v2163_v23 = vld [vmem:[%s2600_s2 + $0x8] sm:$0xff]  }
 0x573   : > { %v1285_v25 = vpack.c.bf16 %v1284_v24, %v1284_v24  ;;  %v2164_v24 = vld [vmem:[%s2600_s2] sm:$0xff]  }
 0x575   : > { %2010 = vmatmul.mubr.msk.bf16.vlgmr.msra.gmra.mxu0 %vm874_vm5, %v1285_v25  ;;  %v1440_v25 = vrot.slane %v2612_v10, %v1439_v8 }
 0x576   : > { %2025 = vmatprep.mubr.msk.bf16.mxu0 %vm2356_vm3, %v2355_v33  ;;  %2022 = vmatpush3.bf16.msra.mxu0 %v2159_v5 }
 0x577   : > { %2023 = vmatprep.subr.bf16.mxu0 %v2355_v33 }
 0x57a   : > { %2024 = vmatpush3.bf16.msra.mxu0 %v2160_v6 }
 0x5b3   : > { %v974_v26 = vpop.f32.mrf.mxu0 }
 0x5b4   : > { %v980_v27 = vpack.c.bf16 %v974_v26, %v974_v26 }
 0x5b5   : > { %v1975_v28 = vpop.f32.mrf.mxu0 }
 0x5b6   : > { %982 = vst.msk [vmem:[#allocation3] sm:$0xf] %vm981_vm7, %v980_v27 }
 0x5b7   : > { %v977_v29 = vpop.f32.mrf.mxu0 }
 0x5b9   : > { %v1976_v30 = vpop.f32.mrf.mxu0 }
 0x625   : > { %v1090_v31 = vpop.f32.mrf.mxu0 }
 0x626   : > { %v1902_v32 = vpack.c.bf16 %v1090_v31, %v1090_v31 }
 0x627   : > { %v1987_v34 = vpop.f32.mrf.mxu0 }
 0x628   : > { %1100 = vrot.lane.b32.xlu1 %v1902_v32, %s2360_s5 }
 0x629   : > { %v1093_v35 = vpop.f32.mrf.mxu0 }
 0x62b   : > { %v1988_v36 = vpop.f32.mrf.mxu0 }
 0x62d   : > { %v1209_v38 = vpop.f32.mrf.mxu0 }
 0x62e   : > { %v1903_v41 = vpack.c.bf16 %v1209_v38, %v1209_v38 }
 0x62f   : > { %v1999_v42 = vpop.f32.mrf.mxu0 }
 0x630   : > { %1219 = vrot.lane.b32.xlu0 %v1903_v41, %s2361_s10 }
 0x631   : > { %v1212_v43 = vpop.f32.mrf.mxu0 }
 0x633   : > { %v2000_v44 = vpop.f32.mrf.mxu0 }
 0x635   : > { %v1328_v45 = vpop.f32.mrf.mxu0 }
 0x636   : > { %v1904_v46 = vpack.c.bf16 %v1328_v45, %v1328_v45 }
 0x637   : > { %v2011_v47 = vpop.f32.mrf.mxu0 }
 0x638   : > { %1338 = vrot.lane.b32.xlu1 %v1904_v46, %s2362_s29 }
 0x639   : > { %v1331_v48 = vpop.f32.mrf.mxu0 }
 0x63b   : > { %v2012_v49 = vpop.f32.mrf.mxu0 }
 0x69a   : > { %v1101_v50 = vpop.permute.xlu1 %1100 }
 0x69b   : > { %1104 = vst.msk [vmem:[#allocation3] sm:$0xf] %vm1103_vm8, %v1101_v50 }
 0x6a2   : > { %v1220_v51 = vpop.permute.xlu0 %1219 }
 0x6a3   : > { %1223 = vst.msk [vmem:[#allocation3] sm:$0xf] %vm1222_vm9, %v1220_v51 }
 0x6aa   : > { %v1339_v52 = vpop.permute.xlu1 %1338 }
 0x6ab   : > { %1342 = vst.msk [vmem:[#allocation3] sm:$0xf] %vm1341_vm10, %v1339_v52 }
 0x6b2   : > { %v1343_v53 = vld [vmem:[#allocation3] sm:$0xf] }
 0x6b3   : > { %2018 = vmatmul.mubr.msk.bf16.vlgmr.msra.gmra.mxu1 %vm701_vm4, %v1343_v53 }
 0x6b4   : > { %2037 = vmatprep.mubr.msk.bf16.mxu1 %vm2356_vm3, %v2355_v33  ;;  %2030 = vmatpush3.bf16.msra.mxu1 %v2161_v22 }
 0x6b5   : > { %2031 = vmatprep.subr.bf16.mxu1 %v2355_v33 }
 0x6b8   : > { %2032 = vmatpush3.bf16.msra.mxu1 %v2162_v12 }
 0x6b9   : > { %2033 = vmatprep.subr.bf16.mxu1 %v2355_v33 }
 0x6bc   : > { %2034 = vmatpush3.bf16.msra.mxu1 %v2163_v23 }
 0x6bd   : > { %2035 = vmatprep.subr.bf16.mxu1 %v2355_v33 }
 0x6c0   : > { %2036 = vmatpush3.bf16.msra.mxu1 %v2164_v24 }
 0x773   : > { %v1401_v56 = vpop.f32.mrf.mxu1 }
 0x774   : > { %v1402_v57 = vadd.f32 %v1401_v56, %v1351_v55 }
 0x775   : > { %v2019_v58 = vpop.f32.mrf.mxu1 }
 0x776   : > { %v2730_v59 = vadd.f32 %v1402_v57, %v2610_v9 }
 0x777   : > { %v1404_v60 = vpop.f32.mrf.mxu1 }
 0x778   : > { %v1408_v61 = vsel %vm701_vm4, %v2730_v59, 0.0 }
 0x779   : > { %1409 = vadd.xlane.f32.xlu0 %v1408_v61  ;;  %v2020_v62 = vpop.f32.mrf.mxu1 }
 0x802   : > { %v1410_v63 = vpop.xlane.xlu0 %1409 }
 0x803   : > { %v1412_v0 = vmul.f32 0.03125, %v1410_v63 }
 0x805   : > { %v1413_v1 = vsub.f32 %v2730_v59, %v1412_v0 }
 0x807   : > { %v1414_v2 = vmul.f32 %v1413_v1, %v1413_v1 }
 0x809   : > { %v1415_v3 = vsel %vm701_vm4, %v1414_v2, 0.0 }
 0x80a   : > { %1416 = vadd.xlane.f32.xlu1 %v1415_v3 }
 0x893   : > { %v1417_v9 = vpop.xlane.xlu1 %1416 }
 0x894   : > { %v1418_v7 = vmul.f32 0.03125, %v1417_v9 }
 0x896   : > { %v1419_v11 = vadd.f32 1e-06, %v1418_v7 }
 0x898   : > { %2181 = vrsqrt.f32 %v1419_v11 }
 0x8a5   : > { %v2182_v16 = vpop.eup %2181 }
 0x8a6   : > { %v1421_v17 = vmul.f32 %v2182_v16, %v1413_v1 }
 0x8a8   : > { %v1426_v19 = vmul.f32 %v1425_v15, %v1421_v17 }
 0x8aa   : > { %v1431_v20 = vadd.f32 %v1430_v18, %v1426_v19 }
 0x8ac   : > { %v1432_v21 = vpack.c.bf16 %v1431_v20, %v1431_v20 }
 0x8ae   : > { %2026 = vmatmul.mubr.msk.bf16.vlgmr.msra.gmra.mxu0 %vm701_vm4, %v1432_v21 }
 0x96e   : > { %v1490_v26 = vpop.f32.mrf.mxu0 }
 0x96f   : > { %v1491_v27 = vadd.f32 %v1490_v26, %v1440_v25 }
 0x970   : > { %v2027_v28 = vpop.f32.mrf.mxu0 }
 0x971   : > { %v1497_v29 = vmul.f32 %v1491_v27, %v1491_v27  ;;  %v1496_v38 = vmul.f32 0.5, %v1491_v27 }
 0x972   : > { %v1493_v30 = vpop.f32.mrf.mxu0 }
 0x973   : > { %v1498_v31 = vmul.f32 %v1497_v29, %v1491_v27 }
 0x974   : > { %v2028_v32 = vpop.f32.mrf.mxu0 }
 0x975   : > { %v1499_v34 = vmul.f32 0.044715, %v1498_v31 }
 0x977   : > { %v1500_v35 = vadd.f32 %v1499_v34, %v1491_v27 }
 0x979   : > { %v1501_v36 = vmul.f32 0.7978846, %v1500_v35 }
 0x97b   : > { %2183 = vtanh.f32 %v1501_v36 }
 0x988   : > { %v2184_v37 = vpop.eup %2183 }
 0x989   : > { %v1503_v33 = vadd.f32 1.0, %v2184_v37 }
 0x98b   : > { %v1504_v40 = vmul.f32 %v1503_v33, %v1496_v38 }
 0x98d   : > { %v1505_v41 = vpack.c.bf16 %v1504_v40, %v1504_v40 }
 0x98f   : > { %2038 = vmatmul.mubr.msk.bf16.vlgmr.msra.gmra.mxu1 %vm1542_vm11, %v1505_v41 }
 0xa4f   : > { %v1580_v42 = vpop.f32.mrf.mxu1 }
 0xa50   : > { %v1581_v43 = vadd.f32 %v1580_v42, %v1517_v39 }
 0xa51   : > { %v2039_v44 = vpop.f32.mrf.mxu1  ;;  %1590 = sbr.rel (%p1889_p4) target bundleno = 2647 (0xa57), region = 92 }
 0xa52   : > { %v1586_v45 = vadd.f32 %v1581_v43, %v2730_v59 }
 0xa53   : > { %v1583_v46 = vpop.f32.mrf.mxu1 }
 0xa55   : > { %v2040_v47 = vpop.f32.mrf.mxu1 }
 0xa56   : > { %1591 = vst.msk [vmem:[#allocation2] sm:$0xff] %vm701_vm4, %v1586_v45 }
 0xa57 PF: > { %p1890_p3 = scmp.ne.s32.totalorder %s2329_s24, 1 }
 0xa58   : > { %s2874_s11 = sld [smem:[#allocation32_spill]] (!%p1890_p3) }
 0xa59   : > { %1595 = sbr.rel (%p1890_p3) target bundleno = 2963 (0xb93), region = 96 }
 0xa5e   : > { %v1597_v48 = vsel %vm701_vm4, %v1586_v45, 0.0  ;;  %v1596_v56 = vld [vmem:[%s2874_s11] sm:$0x3] }
 0xa5f   : > { %1598 = vadd.xlane.f32.xlu0 %v1597_v48  ;;  %v1613_v57 = vrot.slane %v1596_v56, %v2683_v4  ;;  %v1618_v60 = vrot.slane %v1596_v56, %v1439_v8 }
 0xae8   : > { %v1599_v10 = vpop.xlane.xlu0 %1598 }
 0xae9   : > { %v1600_v49 = vmul.f32 0.03125, %v1599_v10 }
 0xaeb   : > { %v1601_v50 = vsub.f32 %v1586_v45, %v1600_v49 }
 0xaed   : > { %v1602_v51 = vmul.f32 %v1601_v50, %v1601_v50 }
 0xaef   : > { %v1603_v52 = vsel %vm701_vm4, %v1602_v51, 0.0 }
 0xaf0   : > { %1604 = vadd.xlane.f32.xlu0 %v1603_v52 }
 0xb79   : > { %v1605_v53 = vpop.xlane.xlu0 %1604 }
 0xb7a   : > { %v1606_v54 = vmul.f32 0.03125, %v1605_v53 }
 0xb7c   : > { %v1607_v55 = vadd.f32 1e-06, %v1606_v54 }
 0xb7e   : > { %2185 = vrsqrt.f32 %v1607_v55 }
 0xb8b   : > { %v2186_v58 = vpop.eup %2185 }
 0xb8c   : > { %v1609_v59 = vmul.f32 %v2186_v58, %v1601_v50 }
 0xb8e   : > { %v1614_v61 = vmul.f32 %v1613_v57, %v1609_v59 }
 0xb90   : > { %v1619_v62 = vadd.f32 %v1618_v60, %v1614_v61 }
 0xb92   : > { %1620 = vst.msk [vmem:[%s2605_s6] sm:$0xff] %vm701_vm4, %v1619_v62 }
 0xb93 PF: > { %s2875_s24 = sld [smem:[#allocation20_spill]]  ;;  %s1892_s14 = sshll.u32 %s2333_s25, 7 }
 0xb94   : > { %s2876_s17 = sld [smem:[#allocation33_spill]]  ;;  %s1635_s16 = sshll.u32 %s2605_s6, 4  ;;  %s1636_s16 = int_to_ptr.vmem [resolvable:$true] %s1635_s16 }
 0xb95   : > { %s1622_s15 = scalar_lea.sflag [#allocation6], %s2545_s20  ;;  %s2241_s13 = scalar_lea.vmem %s1636_s16, 128 }
 0xb96   : > { %p2242_p2 = scmp.ne.s32.totalorder %s1636_s16, %s2241_s13  ;;  %s2363_s3 = smov [#allocation9]  }
 0xb97   : > { %s2245_s12 = sshll.u32 %s2363_s3, 4  ;;  %s2246_s12 = int_to_ptr.vmem [resolvable:$false] %s2245_s12 }
 0xb98   : > { %s2247_s19 = scalar_lea.vmem %s2246_s12, 256  ;;  %p2248_p6 = scmp.lt.s32.totalorder %s1636_s16, %s2246_s12 }
 0xb99   : > { %p2877_p5 = scmp.ne.s32.totalorder %s2875_s24, 0  ;;  %p2249_p11 = scmp.lt.s32.totalorder %s2247_s19, %s2241_s13 }
 0xb9a   : > { %s1633_s9 = scalar_lea.hbm %s2876_s17, %s1892_s14 }
 0xb9b   : > { %p2243_p7 = pnand %p2242_p2, %p2877_p5  ;;  %p2250_p13 = por %p2249_p11, %p2248_p6 }
 0xb9d   : > { %p2244_p9 = pneg %p2243_p7 }
 0xb9f   : > { %p2251_p10 = pnand %p2250_p13, %p2244_p9 }
 0xba1   : > { %2254 = shalt.err (!%p2251_p10)
}
 0xba2   : > { %s2255_s25 = scalar_lea.hbm %s1633_s9, 128  ;;  %s2259_s27 = scalar_lea.hbm %s2876_s17, 256 }
 0xba3   : > { %p2256_p8 = scmp.ne.s32.totalorder %s1633_s9, %s2255_s25  ;;  %p2260_p1 = scmp.lt.s32.totalorder %s1633_s9, %s2876_s17 }
 0xba4   : > { %p2261_p4 = scmp.lt.s32.totalorder %s2259_s27, %s2255_s25 }
 0xba5   : > { %p2257_p12 = pnand %p2256_p8, %p2877_p5 }
 0xba6   : > { %p2262_p3 = por %p2261_p4, %p2260_p1 }
 0xba7   : > { %p2258_p0 = pneg %p2257_p12 }
 0xba9   : > { %p2263_p2 = pnand %p2262_p3, %p2258_p0 }
 0xbab   : > { %2266 = shalt.err (!%p2263_p2)
}
 0xbac   : > { %2047 = dma.vmem_to_hbm [thread:$0]  (%p2877_p5), %s1636_s16, 128, %s1633_s9, %s1622_s15  }
 0xbad PF: > { %s2878_s23 = sld [smem:[#allocation13_spill]]  ;;  %p2064_p7 = scmp.ge.s32.totalorder %s2345_s28, 2 }
 0xbae   : > { %s2879_s0 = sld [smem:[#allocation18_spill]] }
 0xbb3   : > { %s1647_s1 = sand.u32 1, %s2878_s23  }
 0xbb4   : > { %p2880_p9 = scmp.ne.s32.totalorder %s2879_s0, 0  ;;  %s1648_s4 = scalar_lea.sflag [#allocation6], %s1647_s1 }
 0xbb6   : > { %p2058_p6 = pnand %p2064_p7, %p2880_p9 }
 0xbb8   : > { %p2059_p11 = pneg %p2058_p6 }
 0xbba   : > { %2312 = dma.done.wait (%p2059_p11), %s1648_s4, 128  }
 0xbbb   : > { %2314 = vsyncadd (%p2059_p11), %s1648_s4, 4294967168  ;;  %s29_s28 = sadd.s32 1, %s2345_s28   ;;  %s2881_s21 = sld [smem:[#allocation14_spill]] }
 0xbbc   : > { %p26_p13 = scmp.ge.s32.totalorder %s29_s28, 6   ;;  %s2882_s22 = sld [smem:[#allocation15_spill]] }
 0xbbd   : > { %s2883_s23 = sld [smem:[#allocation22_spill]] }
 0xbbe   : > { %s2884_s24 = sld [smem:[#allocation16_spill]]  ;;  %28 = sbr.rel (!%p26_p13) target bundleno = 20 (0x14), region = 164 }
 0xbbf   : > { %s2885_s25 = sld [smem:[#allocation17_spill]] }
 0xbc0   : > { %s2886_s26 = sld [smem:[#allocation19_spill]] }
 0xbc1   : > { %s2887_s27 = sld [smem:[#allocation21_spill]] }
 0xbc3   :  { %1653 = vsyncpa [#allocation5], 1 }
 0xbc4   :  { %1655 = vsyncpa [#allocation5 + $0x1], 1 }
 0xbc5   :  { %1656 = vsyncpa [#allocation8], 1 }
 0xbc6   :  { %1657 = vsyncpa [#allocation6], 1 }
 0xbc7   :  { %1659 = vsyncpa [#allocation6 + $0x1], 1 }

</bundles_post_ra>
